<compile_context>
chip_gen: v5e
topology: v5e:2x2
jax: 0.10.0
libtpu: 0.0.40
codegen_flags: <defaults>
</compile_context>

<pallas_src>
import jax
import jax.numpy as jnp
from jax.experimental import pallas as pl
from jax.experimental.pallas import tpu as pltpu

# ----------------------------- config ---------------------------------
BATCH = 2
IN_CH = 3
IMG = 64            # small image: 4x4 grid of 16x16 patches
PATCH = 16
EMB = 256           # emb_size (multiple of 128 -> lane friendly)
N_HEADS = 1         # module default
N_CLASS = 10

NP = (IMG // PATCH) ** 2            # patches per image (16)
PATCH_DIM = IN_CH * PATCH * PATCH   # 768
ROWS_PAD = 8                        # padded query/batch rows (>= BATCH, mult of 8)
N_CLASS_PAD = 128                   # lane-dense padded logits
SCALE = 1.0 / float(EMB // N_HEADS) ** 0.5


# --------------------------- fused kernel ------------------------------
def _vih_kernel(patches_ref, proj_w_ref, proj_b_ref, q_ref,
                wkv_ref, bkv_ref, wo_ref, bo_ref,
                ln_g_ref, ln_b_ref, fc_w_ref, fc_b_ref, mask_ref, out_ref):
    f32 = jnp.float32
    bf16 = jnp.bfloat16

    # ---- patch embedding: Conv2d(k=s=PATCH) lowered to a single matmul ----
    # patches already bf16 (cast fused into the wrapper's reshape/transpose).
    mem = jnp.dot(patches_ref[...], proj_w_ref[...],
                  preferred_element_type=f32) + proj_b_ref[...]      # (B*NP, E) f32

    # ---- Hopfield layer ----
    # TODO(synk): Hopfield class source was not provided; implemented as a
    # single-step softmax cross-attention (q/k/v/out projections, n_heads=1,
    # scale = 1/sqrt(d_head)).
    # Query projection (cls_token @ Wq + bq) * scale was precomputed at
    # param-init (data-independent) and arrives as q_ref (ROWS_PAD, E) bf16.
    kv = (jnp.dot(mem.astype(bf16), wkv_ref[...],
                  preferred_element_type=f32) + bkv_ref[...]).astype(bf16)
    k = kv[:, :EMB]                                                   # (B*NP, E) bf16
    v = kv[:, EMB:]                                                   # (B*NP, E) bf16

    # scores[b, c] = <q_b, k_c> over ALL batches' keys; block-diagonal
    # additive mask (precomputed, 0 / -1e30) restricts each row to its own
    # batch's NP keys -> per-batch softmax from ONE plain matmul.
    scores = jax.lax.dot_general(q_ref[...], k, (((1,), (1,)), ((), ())),
                                 preferred_element_type=f32)          # (ROWS_PAD, B*NP)
    scores = scores + mask_ref[...]
    scores = scores - jnp.max(scores, axis=-1, keepdims=True)
    p = jnp.exp(scores)
    p = p * pl.reciprocal(jnp.sum(p, axis=-1, keepdims=True), approx=True)
    attn = jnp.dot(p.astype(bf16), v, preferred_element_type=f32)     # (ROWS_PAD, E)
    o = jnp.dot(attn.astype(bf16), wo_ref[...],
                preferred_element_type=f32) + bo_ref[...]

    # ---- ReLU -> LayerNorm(EMB, eps=1e-5) ----
    h = jnp.maximum(o, 0.0)
    mu = jnp.mean(h, axis=-1, keepdims=True)
    var = jnp.mean((h - mu) ** 2, axis=-1, keepdims=True)
    hn = (h - mu) * jax.lax.rsqrt(var + 1e-5)
    hn = hn * ln_g_ref[...] + ln_b_ref[...]

    # ---- classification head (output padded to 128 lanes) ----
    out_ref[...] = jnp.dot(hn.astype(bf16), fc_w_ref[...],
                           preferred_element_type=f32) + fc_b_ref[...]


# ----------------------------- wrapper ---------------------------------
def vih_forward(x, params):
    B, C, H, W = x.shape
    assert B <= ROWS_PAD and C == IN_CH and H == IMG and W == IMG
    nH, nW = H // PATCH, W // PATCH
    # einops Rearrange equivalent: non-overlapping patches, flattened in
    # (c, ph, pw) order to match Conv2d weight.reshape(E, C*P*P).T.
    # bf16 cast fused into this XLA transpose (halves the activation DMA).
    patches = (x.reshape(B, C, nH, PATCH, nW, PATCH)
                 .transpose(0, 2, 4, 1, 3, 5)
                 .reshape(B * nH * nW, C * PATCH * PATCH)
                 .astype(jnp.bfloat16))

    out_pad = pl.pallas_call(
        _vih_kernel,
        out_shape=jax.ShapeDtypeStruct((ROWS_PAD, N_CLASS_PAD), jnp.float32),
        in_specs=[pl.BlockSpec(memory_space=pltpu.MemorySpace.VMEM)] * 13,
        out_specs=pl.BlockSpec(memory_space=pltpu.MemorySpace.VMEM),
        # Guard-rail only: resident footprint is < 2 MiB, well under the
        # v7x 64 MiB physical / 32 MiB default-scoped VMEM.
        compiler_params=pltpu.CompilerParams(vmem_limit_bytes=4 * 1024 * 1024),
    )(patches,
      params["proj_w"], params["proj_b"], params["q_scaled"],
      params["wkv"], params["bkv"], params["wo"], params["bo"],
      params["ln_g"], params["ln_b"],
      params["fc_w"], params["fc_b"], params["attn_mask"])

    return out_pad[:B, :N_CLASS]


# ----------------------------- params ----------------------------------
def _xavier(key, shape):
    fan_in, fan_out = shape
    bound = (6.0 / (fan_in + fan_out)) ** 0.5
    return jax.random.uniform(key, shape, jnp.float32, -bound, bound)


def init_params(key):
    ks = iter(jax.random.split(key, 12))

    # nn.Linear(emb_size, n_class), padded to 128 lanes (lane-dense output)
    fc_w = _xavier(next(ks), (EMB, N_CLASS))
    fc_b = jax.random.uniform(next(ks), (N_CLASS,), jnp.float32,
                              -1.0 / EMB ** 0.5, 1.0 / EMB ** 0.5)
    fc_w_pad = jnp.zeros((EMB, N_CLASS_PAD), jnp.float32).at[:, :N_CLASS].set(fc_w)
    fc_b_pad = jnp.zeros((1, N_CLASS_PAD), jnp.float32).at[0, :N_CLASS].set(fc_b)

    # Data-independent query projection precomputed once:
    #   q = (cls_token @ Wq + bq) * (1/sqrt(d_head)), broadcast over rows.
    # If real torch weights are loaded, recompute q_scaled the same way.
    cls_token = jax.random.normal(next(ks), (1, EMB), jnp.float32)
    wq = _xavier(next(ks), (EMB, EMB))
    bq = jnp.zeros((1, EMB), jnp.float32)
    q_scaled = jnp.broadcast_to((cls_token @ wq + bq) * SCALE,
                                (ROWS_PAD, EMB)).astype(jnp.bfloat16)

    # Precomputed additive block-diagonal softmax mask (0 / -1e30):
    # row b may only attend to its own batch's NP keys; fully-masked padded
    # rows degrade to a uniform softmax and are sliced off in the wrapper.
    row = jnp.arange(ROWS_PAD, dtype=jnp.int32)[:, None]
    col = jnp.arange(BATCH * NP, dtype=jnp.int32)[None, :]
    attn_mask = jnp.where((col // NP) == row, 0.0, -1e30).astype(jnp.float32)

    return {
        # Conv2d(IN_CH, EMB, k=s=PATCH) folded to (C*P*P, EMB).
        # NOTE: if real torch conv weights are loaded, use
        # weight.reshape(EMB, C*P*P).T to match the patch flatten order.
        "proj_w": _xavier(next(ks), (PATCH_DIM, EMB)).astype(jnp.bfloat16),
        "proj_b": jax.random.uniform(next(ks), (1, EMB), jnp.float32,
                                     -1.0 / PATCH_DIM ** 0.5, 1.0 / PATCH_DIM ** 0.5),
        "q_scaled": q_scaled,
        # Hopfield k,v projections fused into one (E, 2E) weight
        "wkv": _xavier(next(ks), (EMB, 2 * EMB)).astype(jnp.bfloat16),
        "bkv": jnp.zeros((1, 2 * EMB), jnp.float32),
        "wo": _xavier(next(ks), (EMB, EMB)).astype(jnp.bfloat16),
        "bo": jnp.zeros((1, EMB), jnp.float32),
        # nn.LayerNorm(emb_size), default affine init
        "ln_g": jnp.ones((1, EMB), jnp.float32),
        "ln_b": jnp.zeros((1, EMB), jnp.float32),
        "fc_w": fc_w_pad.astype(jnp.bfloat16),
        "fc_b": fc_b_pad,
        "attn_mask": attn_mask,
    }


# ------------------------------ main ------------------------------------
if __name__ == "__main__":
    key = jax.random.PRNGKey(0)
    pkey, xkey = jax.random.split(key)
    params = init_params(pkey)
    x = jax.random.normal(xkey, (BATCH, IN_CH, IMG, IMG), jnp.float32)

    out = jax.jit(vih_forward)(x, params)
    out = jax.block_until_ready(out)
    assert out.shape == (BATCH, N_CLASS) and out.dtype == jnp.float32
    assert bool(jnp.all(jnp.isfinite(out)))
    print("KERNEL_OK")
</pallas_src>

<mosaic_0001>
module attributes {stable_mosaic.version = 11 : i64} {
  func.func @_vih_kernel(%arg0: memref<32x768xbf16, #tpu.memory_space<vmem>>, %arg1: memref<768x256xbf16, #tpu.memory_space<vmem>>, %arg2: memref<1x256xf32, #tpu.memory_space<vmem>>, %arg3: memref<8x256xbf16, #tpu.memory_space<vmem>>, %arg4: memref<256x512xbf16, #tpu.memory_space<vmem>>, %arg5: memref<1x512xf32, #tpu.memory_space<vmem>>, %arg6: memref<256x256xbf16, #tpu.memory_space<vmem>>, %arg7: memref<1x256xf32, #tpu.memory_space<vmem>>, %arg8: memref<1x256xf32, #tpu.memory_space<vmem>>, %arg9: memref<1x256xf32, #tpu.memory_space<vmem>>, %arg10: memref<256x128xbf16, #tpu.memory_space<vmem>>, %arg11: memref<1x128xf32, #tpu.memory_space<vmem>>, %arg12: memref<8x32xf32, #tpu.memory_space<vmem>>, %arg13: memref<8x128xf32, #tpu.memory_space<vmem>>) attributes {dimension_semantics = [], scalar_prefetch = 0 : i64, scratch_operands = 0 : i64, tpu.core_type = #tpu.core_type<tc>} {
    %c0 = arith.constant 0 : index
    %c0_0 = arith.constant 0 : index
    %0 = vector.load %arg0[%c0, %c0_0] : memref<32x768xbf16, #tpu.memory_space<vmem>>, vector<32x768xbf16>
    %c0_1 = arith.constant 0 : index
    %c0_2 = arith.constant 0 : index
    %1 = vector.load %arg1[%c0_1, %c0_2] : memref<768x256xbf16, #tpu.memory_space<vmem>>, vector<768x256xbf16>
    %cst = arith.constant dense<0.000000e+00> : vector<32x256xf32>
    %2 = tpu.matmul %0, %1, %cst {dimension_numbers = #tpu.dot_dimension_numbers<[1], [0], [0], [1], [0, 0, 1, 1], [], []>} : vector<32x768xbf16>, vector<768x256xbf16>, vector<32x256xf32> -> vector<32x256xf32>
    %c0_3 = arith.constant 0 : index
    %c0_4 = arith.constant 0 : index
    %3 = vector.load %arg2[%c0_3, %c0_4] : memref<1x256xf32, #tpu.memory_space<vmem>>, vector<1x256xf32>
    %4 = vector.broadcast %3 : vector<1x256xf32> to vector<32x256xf32>
    %5 = arith.addf %2, %4 : vector<32x256xf32>
    %6 = arith.truncf %5 : vector<32x256xf32> to vector<32x256xbf16>
    %c0_5 = arith.constant 0 : index
    %c0_6 = arith.constant 0 : index
    %7 = vector.load %arg4[%c0_5, %c0_6] : memref<256x512xbf16, #tpu.memory_space<vmem>>, vector<256x512xbf16>
    %cst_7 = arith.constant dense<0.000000e+00> : vector<32x512xf32>
    %8 = tpu.matmul %6, %7, %cst_7 {dimension_numbers = #tpu.dot_dimension_numbers<[1], [0], [0], [1], [0, 0, 1, 1], [], []>} : vector<32x256xbf16>, vector<256x512xbf16>, vector<32x512xf32> -> vector<32x512xf32>
    %c0_8 = arith.constant 0 : index
    %c0_9 = arith.constant 0 : index
    %9 = vector.load %arg5[%c0_8, %c0_9] : memref<1x512xf32, #tpu.memory_space<vmem>>, vector<1x512xf32>
    %10 = vector.broadcast %9 : vector<1x512xf32> to vector<32x512xf32>
    %11 = arith.addf %8, %10 : vector<32x512xf32>
    %12 = arith.truncf %11 : vector<32x512xf32> to vector<32x512xbf16>
    %13 = vector.extract_strided_slice %12 {offsets = [0, 0], sizes = [32, 256], strides = [1, 1]} : vector<32x512xbf16> to vector<32x256xbf16>
    %14 = vector.extract_strided_slice %12 {offsets = [0, 256], sizes = [32, 256], strides = [1, 1]} : vector<32x512xbf16> to vector<32x256xbf16>
    %c0_10 = arith.constant 0 : index
    %c0_11 = arith.constant 0 : index
    %15 = vector.load %arg3[%c0_10, %c0_11] : memref<8x256xbf16, #tpu.memory_space<vmem>>, vector<8x256xbf16>
    %cst_12 = arith.constant dense<0.000000e+00> : vector<8x32xf32>
    %16 = tpu.matmul %15, %13, %cst_12 {dimension_numbers = #tpu.dot_dimension_numbers<[1], [1], [0], [0], [0, 0, 1, 0], [], []>} : vector<8x256xbf16>, vector<32x256xbf16>, vector<8x32xf32> -> vector<8x32xf32>
    %c0_13 = arith.constant 0 : index
    %c0_14 = arith.constant 0 : index
    %17 = vector.load %arg12[%c0_13, %c0_14] : memref<8x32xf32, #tpu.memory_space<vmem>>, vector<8x32xf32>
    %18 = arith.addf %16, %17 : vector<8x32xf32>
    %cst_15 = arith.constant dense<0xFF800000> : vector<8xf32>
    %19 = vector.multi_reduction <maximumf>, %18, %cst_15 [1] : vector<8x32xf32> to vector<8xf32>
    %20 = vector.shape_cast %19 : vector<8xf32> to vector<8x1xf32>
    %21 = vector.broadcast %20 : vector<8x1xf32> to vector<8x32xf32>
    %22 = arith.subf %18, %21 : vector<8x32xf32>
    %23 = math.exp %22 : vector<8x32xf32>
    %cst_16 = arith.constant dense<0.000000e+00> : vector<8xf32>
    %24 = vector.multi_reduction <add>, %23, %cst_16 [1] : vector<8x32xf32> to vector<8xf32>
    %25 = vector.shape_cast %24 : vector<8xf32> to vector<8x1xf32>
    %26 = tpu.reciprocal %25 {approx = true} : vector<8x1xf32> -> vector<8x1xf32>
    %27 = vector.broadcast %26 : vector<8x1xf32> to vector<8x32xf32>
    %28 = arith.mulf %23, %27 : vector<8x32xf32>
    %29 = arith.truncf %28 : vector<8x32xf32> to vector<8x32xbf16>
    %cst_17 = arith.constant dense<0.000000e+00> : vector<8x256xf32>
    %30 = tpu.matmul %29, %14, %cst_17 {dimension_numbers = #tpu.dot_dimension_numbers<[1], [0], [0], [1], [0, 0, 1, 1], [], []>} : vector<8x32xbf16>, vector<32x256xbf16>, vector<8x256xf32> -> vector<8x256xf32>
    %31 = arith.truncf %30 : vector<8x256xf32> to vector<8x256xbf16>
    %c0_18 = arith.constant 0 : index
    %c0_19 = arith.constant 0 : index
    %32 = vector.load %arg6[%c0_18, %c0_19] : memref<256x256xbf16, #tpu.memory_space<vmem>>, vector<256x256xbf16>
    %cst_20 = arith.constant dense<0.000000e+00> : vector<8x256xf32>
    %33 = tpu.matmul %31, %32, %cst_20 {dimension_numbers = #tpu.dot_dimension_numbers<[1], [0], [0], [1], [0, 0, 1, 1], [], []>} : vector<8x256xbf16>, vector<256x256xbf16>, vector<8x256xf32> -> vector<8x256xf32>
    %c0_21 = arith.constant 0 : index
    %c0_22 = arith.constant 0 : index
    %34 = vector.load %arg7[%c0_21, %c0_22] : memref<1x256xf32, #tpu.memory_space<vmem>>, vector<1x256xf32>
    %35 = vector.broadcast %34 : vector<1x256xf32> to vector<8x256xf32>
    %36 = arith.addf %33, %35 : vector<8x256xf32>
    %cst_23 = arith.constant 0.000000e+00 : f32
    %37 = vector.broadcast %cst_23 : f32 to vector<8x256xf32>
    %38 = arith.maximumf %36, %37 : vector<8x256xf32>
    %cst_24 = arith.constant dense<0.000000e+00> : vector<8xf32>
    %39 = vector.multi_reduction <add>, %38, %cst_24 [1] : vector<8x256xf32> to vector<8xf32>
    %40 = vector.shape_cast %39 : vector<8xf32> to vector<8x1xf32>
    %cst_25 = arith.constant 2.560000e+02 : f32
    %41 = vector.broadcast %cst_25 : f32 to vector<8x1xf32>
    %42 = arith.divf %40, %41 : vector<8x1xf32>
    %43 = vector.broadcast %42 : vector<8x1xf32> to vector<8x256xf32>
    %44 = arith.subf %38, %43 : vector<8x256xf32>
    %45 = arith.mulf %44, %44 : vector<8x256xf32>
    %cst_26 = arith.constant dense<0.000000e+00> : vector<8xf32>
    %46 = vector.multi_reduction <add>, %45, %cst_26 [1] : vector<8x256xf32> to vector<8xf32>
    %47 = vector.shape_cast %46 : vector<8xf32> to vector<8x1xf32>
    %cst_27 = arith.constant 2.560000e+02 : f32
    %48 = vector.broadcast %cst_27 : f32 to vector<8x1xf32>
    %49 = arith.divf %47, %48 : vector<8x1xf32>
    %50 = vector.broadcast %42 : vector<8x1xf32> to vector<8x256xf32>
    %51 = arith.subf %38, %50 : vector<8x256xf32>
    %cst_28 = arith.constant 9.99999974E-6 : f32
    %52 = vector.broadcast %cst_28 : f32 to vector<8x1xf32>
    %53 = arith.addf %49, %52 : vector<8x1xf32>
    %54 = math.rsqrt %53 : vector<8x1xf32>
    %55 = vector.broadcast %54 : vector<8x1xf32> to vector<8x256xf32>
    %56 = arith.mulf %51, %55 : vector<8x256xf32>
    %c0_29 = arith.constant 0 : index
    %c0_30 = arith.constant 0 : index
    %57 = vector.load %arg8[%c0_29, %c0_30] : memref<1x256xf32, #tpu.memory_space<vmem>>, vector<1x256xf32>
    %58 = vector.broadcast %57 : vector<1x256xf32> to vector<8x256xf32>
    %59 = arith.mulf %56, %58 : vector<8x256xf32>
    %c0_31 = arith.constant 0 : index
    %c0_32 = arith.constant 0 : index
    %60 = vector.load %arg9[%c0_31, %c0_32] : memref<1x256xf32, #tpu.memory_space<vmem>>, vector<1x256xf32>
    %61 = vector.broadcast %60 : vector<1x256xf32> to vector<8x256xf32>
    %62 = arith.addf %59, %61 : vector<8x256xf32>
    %63 = arith.truncf %62 : vector<8x256xf32> to vector<8x256xbf16>
    %c0_33 = arith.constant 0 : index
    %c0_34 = arith.constant 0 : index
    %64 = vector.load %arg10[%c0_33, %c0_34] : memref<256x128xbf16, #tpu.memory_space<vmem>>, vector<256x128xbf16>
    %cst_35 = arith.constant dense<0.000000e+00> : vector<8x128xf32>
    %65 = tpu.matmul %63, %64, %cst_35 {dimension_numbers = #tpu.dot_dimension_numbers<[1], [0], [0], [1], [0, 0, 1, 1], [], []>} : vector<8x256xbf16>, vector<256x128xbf16>, vector<8x128xf32> -> vector<8x128xf32>
    %c0_36 = arith.constant 0 : index
    %c0_37 = arith.constant 0 : index
    %66 = vector.load %arg11[%c0_36, %c0_37] : memref<1x128xf32, #tpu.memory_space<vmem>>, vector<1x128xf32>
    %67 = vector.broadcast %66 : vector<1x128xf32> to vector<8x128xf32>
    %68 = arith.addf %65, %67 : vector<8x128xf32>
    %c0_38 = arith.constant 0 : index
    %c0_39 = arith.constant 0 : index
    %69 = vector.load %arg13[%c0_38, %c0_39] : memref<8x128xf32, #tpu.memory_space<vmem>>, vector<8x128xf32>
    tpu.vector_store %arg13[%c0_38, %c0_39], %68 {strides = array<i32>} : memref<8x128xf32, #tpu.memory_space<vmem>>, vector<8x128xf32>,
    return
  }
}

</mosaic_0001>

<bundles_post_ra>
// kernel: vih_forward.1
= control target key start
LH: loop header
LB: loop body
LE: loop exit
PB: predicated region body
PF: predicated region fallthrough
CT: control target
= control target key end

     0   :  { %vm1540_vm0 = vcmask 261120   ;;  %s4705_s1 = inlined_call_operand.vmem [shape: bf16[768,256], index: 1, kind: input, shape index: {}]   ;;  %s4706_s0 = inlined_call_operand.vmem [shape: bf16[32,768], index: 0, kind: input, shape index: {}]   ;;  %s4707_s4 = inlined_call_operand.vmem [shape: bf16[256,512], index: 4, kind: input, shape index: {}]   ;;  %s4708_s2 = inlined_call_operand.vmem [shape: f32[1,256], index: 2, kind: input, shape index: {}]   ;;  %s4709_s5 = inlined_call_operand.vmem [shape: f32[1,512], index: 5, kind: input, shape index: {}]   ;;  %s4710_s3 = inlined_call_operand.vmem [shape: bf16[8,256], index: 3, kind: input, shape index: {}]   ;;  %s4711_s12 = inlined_call_operand.vmem [shape: f32[8,32], index: 12, kind: input, shape index: {}]   ;;  %s4712_s6 = inlined_call_operand.vmem [shape: bf16[256,256], index: 6, kind: input, shape index: {}]   ;;  %s4713_s7 = inlined_call_operand.vmem [shape: f32[1,256], index: 7, kind: input, shape index: {}]   ;;  %s4714_s10 = inlined_call_operand.vmem [shape: bf16[256,128], index: 10, kind: input, shape index: {}]   ;;  %s4715_s11 = inlined_call_operand.vmem [shape: f32[1,128], index: 11, kind: input, shape index: {}]   ;;  %s4716_s8 = inlined_call_operand.vmem [shape: f32[1,256], index: 8, kind: input, shape index: {}]   ;;  %s4717_s9 = inlined_call_operand.vmem [shape: f32[1,256], index: 9, kind: input, shape index: {}]   ;;  %s4718_s13 = inlined_call_operand.vmem [shape: f32[8,128], index: 13, kind: output, shape index: {}]  }
   0x1   :  { %v2175_v0 = vld [vmem:[%s4705_s1 + $0x70] sm:$0xf]  ;;  %v2978_v1 = vld [vmem:[%s4705_s1 + $0x74] sm:$0xf0]  ;;  %v2167_v11 = vld [vmem:[%s4705_s1 + $0x60] sm:$0xf] }
   0x2   :  { %v2239_v2 = vld [vmem:[%s4705_s1 + $0xf0] sm:$0xf]  ;;  %v2176_v3 = vor.u32 %v2978_v1, %v2175_v0  ;;  %v2994_v4 = vld [vmem:[%s4705_s1 + $0xf4] sm:$0xf0]  ;;  %v2976_v13 = vld [vmem:[%s4705_s1 + $0x64] sm:$0xf0] }
   0x3   :  { %v2303_v5 = vld [vmem:[%s4705_s1 + $0x170] sm:$0xf]  ;;  %v3010_v6 = vld [vmem:[%s4705_s1 + $0x174] sm:$0xf0]  ;;  %v2240_v7 = vor.u32 %v2994_v4, %v2239_v2  ;;  %v2231_v14 = vld [vmem:[%s4705_s1 + $0xe0] sm:$0xf]  ;;  %v2168_v16 = vor.u32 %v2976_v13, %v2167_v11 }
   0x4   :  { %v2304_v8 = vor.u32 %v3010_v6, %v2303_v5  ;;  %v2367_v9 = vld [vmem:[%s4705_s1 + $0x1f0] sm:$0xf]  ;;  %v3026_v10 = vld [vmem:[%s4705_s1 + $0x1f4] sm:$0xf0]  ;;  %699 = vmatpush.bf16.msra.mxu0 %v2176_v3  ;;  %v2992_v15 = vld [vmem:[%s4705_s1 + $0xe4] sm:$0xf0] }
   0x5   :  { %v2368_v12 = vor.u32 %v3026_v10, %v2367_v9  ;;  %718 = vmatpush.bf16.msra.mxu1 %v2240_v7  ;;  %v2232_v17 = vor.u32 %v2992_v15, %v2231_v14  ;;  %v2295_v18 = vld [vmem:[%s4705_s1 + $0x160] sm:$0xf]  ;;  %v3008_v19 = vld [vmem:[%s4705_s1 + $0x164] sm:$0xf0]  ;;  %v2159_v23 = vld [vmem:[%s4705_s1 + $0x50] sm:$0xf] }
   0x6   :  { %737 = vmatpush.bf16.msra.mxu2 %v2304_v8  ;;  %v2359_v20 = vld [vmem:[%s4705_s1 + $0x1e0] sm:$0xf]  ;;  %v2296_v21 = vor.u32 %v3008_v19, %v2295_v18  ;;  %v3024_v22 = vld [vmem:[%s4705_s1 + $0x1e4] sm:$0xf0]  ;;  %v2974_v24 = vld [vmem:[%s4705_s1 + $0x54] sm:$0xf0] }
   0x7   :  { %756 = vmatpush.bf16.msra.mxu3 %v2368_v12  ;;  %v2360_v25 = vor.u32 %v3024_v22, %v2359_v20  ;;  %v2223_v26 = vld [vmem:[%s4705_s1 + $0xd0] sm:$0xf]  ;;  %v2990_v27 = vld [vmem:[%s4705_s1 + $0xd4] sm:$0xf0]  ;;  %v2160_v29 = vor.u32 %v2974_v24, %v2159_v23  ;;  %v2151_v35 = vld [vmem:[%s4705_s1 + $0x40] sm:$0xf] }
   0x8   :  { %v2287_v28 = vld [vmem:[%s4705_s1 + $0x150] sm:$0xf]  ;;  %700 = vmatpush.bf16.msra.mxu0 %v2168_v16  ;;  %v3006_v30 = vld [vmem:[%s4705_s1 + $0x154] sm:$0xf0]  ;;  %v2224_v33 = vor.u32 %v2990_v27, %v2223_v26  ;;  %v2972_v36 = vld [vmem:[%s4705_s1 + $0x44] sm:$0xf0] }
   0x9   :  { %v2351_v31 = vld [vmem:[%s4705_s1 + $0x1d0] sm:$0xf]  ;;  %v3022_v32 = vld [vmem:[%s4705_s1 + $0x1d4] sm:$0xf0]  ;;  %719 = vmatpush.bf16.msra.mxu1 %v2232_v17  ;;  %v2288_v34 = vor.u32 %v3006_v30, %v2287_v28  ;;  %v2215_v37 = vld [vmem:[%s4705_s1 + $0xc0] sm:$0xf]  ;;  %v2152_v44 = vor.u32 %v2972_v36, %v2151_v35 }
   0xa   :  { %738 = vmatpush.bf16.msra.mxu2 %v2296_v21  ;;  %v2352_v38 = vor.u32 %v3022_v32, %v2351_v31  ;;  %v2988_v39 = vld [vmem:[%s4705_s1 + $0xc4] sm:$0xf0]  ;;  %v2279_v40 = vld [vmem:[%s4705_s1 + $0x140] sm:$0xf]  ;;  %v2143_v47 = vld [vmem:[%s4705_s1 + $0x30] sm:$0xf] }
   0xb   :  { %757 = vmatpush.bf16.msra.mxu3 %v2360_v25  ;;  %v3004_v41 = vld [vmem:[%s4705_s1 + $0x144] sm:$0xf0]  ;;  %v2343_v42 = vld [vmem:[%s4705_s1 + $0x1c0] sm:$0xf]  ;;  %v2216_v45 = vor.u32 %v2988_v39, %v2215_v37  ;;  %v2970_v48 = vld [vmem:[%s4705_s1 + $0x34] sm:$0xf0] }
   0xc   :  { %v3020_v43 = vld [vmem:[%s4705_s1 + $0x1c4] sm:$0xf0]  ;;  %701 = vmatpush.bf16.msra.mxu0 %v2160_v29  ;;  %v2280_v46 = vor.u32 %v3004_v41, %v2279_v40  ;;  %v2207_v49 = vld [vmem:[%s4705_s1 + $0xb0] sm:$0xf]  ;;  %v2986_v51 = vld [vmem:[%s4705_s1 + $0xb4] sm:$0xf0]  ;;  %v2144_v56 = vor.u32 %v2970_v48, %v2143_v47 }
   0xd   :  { %720 = vmatpush.bf16.msra.mxu1 %v2224_v33  ;;  %v2344_v50 = vor.u32 %v3020_v43, %v2343_v42  ;;  %v2271_v52 = vld [vmem:[%s4705_s1 + $0x130] sm:$0xf]  ;;  %v3002_v53 = vld [vmem:[%s4705_s1 + $0x134] sm:$0xf0]  ;;  %v2208_v57 = vor.u32 %v2986_v51, %v2207_v49  ;;  %v2135_v59 = vld [vmem:[%s4705_s1 + $0x20] sm:$0xf] }
   0xe   :  { %739 = vmatpush.bf16.msra.mxu2 %v2288_v34  ;;  %v2335_v54 = vld [vmem:[%s4705_s1 + $0x1b0] sm:$0xf]  ;;  %v3018_v55 = vld [vmem:[%s4705_s1 + $0x1b4] sm:$0xf0]  ;;  %v2272_v58 = vor.u32 %v3002_v53, %v2271_v52  ;;  %v2968_v60 = vld [vmem:[%s4705_s1 + $0x24] sm:$0xf0] }
   0xf   :  { %758 = vmatpush.bf16.msra.mxu3 %v2352_v38  ;;  %v2199_v61 = vld [vmem:[%s4705_s1 + $0xa0] sm:$0xf]  ;;  %v2336_v62 = vor.u32 %v3018_v55, %v2335_v54  ;;  %v2984_v63 = vld [vmem:[%s4705_s1 + $0xa4] sm:$0xf0]  ;;  %v2136_v4 = vor.u32 %v2968_v60, %v2135_v59  ;;  %v2127_v7 = vld [vmem:[%s4705_s1 + $0x10] sm:$0xf] }
  0x10   :  { %702 = vmatpush.bf16.msra.mxu0 %v2152_v44  ;;  %v2263_v0 = vld [vmem:[%s4705_s1 + $0x120] sm:$0xf]  ;;  %v3000_v1 = vld [vmem:[%s4705_s1 + $0x124] sm:$0xf0]  ;;  %v2200_v5 = vor.u32 %v2984_v63, %v2199_v61  ;;  %v2966_v8 = vld [vmem:[%s4705_s1 + $0x14] sm:$0xf0] }
  0x11   :  { %721 = vmatpush.bf16.msra.mxu1 %v2216_v45  ;;  %v2327_v2 = vld [vmem:[%s4705_s1 + $0x1a0] sm:$0xf]  ;;  %v3016_v3 = vld [vmem:[%s4705_s1 + $0x1a4] sm:$0xf0]  ;;  %v2264_v6 = vor.u32 %v3000_v1, %v2263_v0  ;;  %v2191_v9 = vld [vmem:[%s4705_s1 + $0x90] sm:$0xf]  ;;  %v2128_v17 = vor.u32 %v2966_v8, %v2127_v7 }
  0x12   :  { %740 = vmatpush.bf16.msra.mxu2 %v2280_v46  ;;  %v2328_v10 = vor.u32 %v3016_v3, %v2327_v2  ;;  %v2982_v11 = vld [vmem:[%s4705_s1 + $0x94] sm:$0xf0]  ;;  %v2255_v12 = vld [vmem:[%s4705_s1 + $0x110] sm:$0xf]  ;;  %v2119_v16 = vld [vmem:[%s4705_s1] sm:$0xf] }
  0x13   :  { %759 = vmatpush.bf16.msra.mxu3 %v2344_v50  ;;  %v2998_v13 = vld [vmem:[%s4705_s1 + $0x114] sm:$0xf0]  ;;  %v2319_v14 = vld [vmem:[%s4705_s1 + $0x190] sm:$0xf]  ;;  %v2964_v18 = vld [vmem:[%s4705_s1 + $0x4] sm:$0xf0]  ;;  %v2192_v21 = vor.u32 %v2982_v11, %v2191_v9 }
  0x14   :  { %703 = vmatpush.bf16.msra.mxu0 %v2144_v56  ;;  %v3014_v15 = vld [vmem:[%s4705_s1 + $0x194] sm:$0xf0]  ;;  %v2183_v19 = vld [vmem:[%s4705_s1 + $0x80] sm:$0xf]  ;;  %v2980_v20 = vld [vmem:[%s4705_s1 + $0x84] sm:$0xf0]  ;;  %v2256_v22 = vor.u32 %v2998_v13, %v2255_v12  ;;  %v2120_v34 = vor.u32 %v2964_v18, %v2119_v16 }
  0x15   :  { %722 = vmatpush.bf16.msra.mxu1 %v2208_v57  ;;  %v2247_v23 = vld [vmem:[%s4705_s1 + $0x100] sm:$0xf]  ;;  %v2996_v24 = vld [vmem:[%s4705_s1 + $0x104] sm:$0xf0]  ;;  %v2320_v26 = vor.u32 %v3014_v15, %v2319_v14  ;;  %v2954_v29 = vld [vmem:[%s4706_s0 + $0x14] sm:$0xf0]  ;;  %v2184_v38 = vor.u32 %v2980_v20, %v2183_v19 }
  0x16   :  { %741 = vmatpush.bf16.msra.mxu2 %v2272_v58  ;;  %v2311_v25 = vld [vmem:[%s4705_s1 + $0x180] sm:$0xf]  ;;  %v3012_v27 = vld [vmem:[%s4705_s1 + $0x184] sm:$0xf0]  ;;  %v2951_v30 = vld [vmem:[%s4706_s0 + $0x4] sm:$0xf]  ;;  %v2248_v39 = vor.u32 %v2996_v24, %v2247_v23 }
  0x17   :  { %760 = vmatpush.bf16.msra.mxu3 %v2336_v62  ;;  %v2071_v28 = vld [vmem:[%s4706_s0] sm:$0xf]  ;;  %v2073_v31 = vld [vmem:[%s4706_s0 + $0x18] sm:$0xf0]  ;;  %v2431_v32 = vld [vmem:[%s4705_s1 + $0x270] sm:$0xf]  ;;  %v2312_v43 = vor.u32 %v3012_v27, %v2311_v25 }
  0x18   :  { %704 = vmatpush.bf16.msra.mxu0 %v2136_v4  ;;  %v3042_v33 = vld [vmem:[%s4705_s1 + $0x274] sm:$0xf0]  ;;  %v2079_v35 = vld [vmem:[%s4706_s0 + $0x8] sm:$0xf]  ;;  %v2495_v36 = vld [vmem:[%s4705_s1 + $0x2f0] sm:$0xf]  ;;  %v3489_v48 = vor.u32 %v2954_v29, %v2071_v28  ;;  %v3500_v53 = vor.u32 %v2951_v30, %v2073_v31 }
  0x19   :  { %723 = vmatpush.bf16.msra.mxu1 %v2200_v5  ;;  %v3058_v37 = vld [vmem:[%s4705_s1 + $0x2f4] sm:$0xf0]  ;;  %v2955_v40 = vld [vmem:[%s4706_s0 + $0x1c] sm:$0xf0]  ;;  %v2952_v41 = vld [vmem:[%s4706_s0 + $0xc] sm:$0xf]  ;;  %v2432_v44 = vor.u32 %v3042_v33, %v2431_v32 }
  0x1a   :  { %742 = vmatpush.bf16.msra.mxu2 %v2264_v6  ;;  %v2081_v42 = vld [vmem:[%s4706_s0 + $0x20] sm:$0xf0]  ;;  %v2977_v45 = vld [vmem:[%s4705_s1 + $0x74] sm:$0xf]  ;;  %v2177_v46 = vld [vmem:[%s4705_s1 + $0x78] sm:$0xf0]  ;;  %v2496_v49 = vor.u32 %v3058_v37, %v2495_v36  ;;  %v3502_v54 = vor.u32 %v2955_v40, %v2079_v35 }
  0x1b   :  { %761 = vmatpush.bf16.msra.mxu3 %v2328_v10  ;;  %v2993_v47 = vld [vmem:[%s4705_s1 + $0xf4] sm:$0xf]  ;;  %v2241_v50 = vld [vmem:[%s4705_s1 + $0xf8] sm:$0xf0]  ;;  %v2423_v51 = vld [vmem:[%s4705_s1 + $0x260] sm:$0xf]  ;;  %v3510_v57 = vor.u32 %v2952_v41, %v2081_v42  ;;  %v2180_v58 = vor.u32 %v2977_v45, %v2177_v46 }
  0x1c   :  { %705 = vmatpush.bf16.msra.mxu0 %v2128_v17  ;;  %v3040_v52 = vld [vmem:[%s4705_s1 + $0x264] sm:$0xf0]  ;;  %v2487_v55 = vld [vmem:[%s4705_s1 + $0x2e0] sm:$0xf]  ;;  %v2244_v59 = vor.u32 %v2993_v47, %v2241_v50  ;;  %v2975_v61 = vld [vmem:[%s4705_s1 + $0x64] sm:$0xf] }
  0x1d   :  { %724 = vmatpush.bf16.msra.mxu1 %v2192_v21  ;;  %v3056_v56 = vld [vmem:[%s4705_s1 + $0x2e4] sm:$0xf0]  ;;  %v2424_v60 = vor.u32 %v3040_v52, %v2423_v51  ;;  %v2169_v62 = vld [vmem:[%s4705_s1 + $0x68] sm:$0xf0]  ;;  %v2991_v63 = vld [vmem:[%s4705_s1 + $0xe4] sm:$0xf] }
  0x1e   :  { %743 = vmatpush.bf16.msra.mxu2 %v2256_v22  ;;  %v2488_v0 = vor.u32 %v3056_v56, %v2487_v55  ;;  %v2233_v1 = vld [vmem:[%s4705_s1 + $0xe8] sm:$0xf0]  ;;  %v2415_v2 = vld [vmem:[%s4705_s1 + $0x250] sm:$0xf]  ;;  %v3038_v3 = vld [vmem:[%s4705_s1 + $0x254] sm:$0xf0]  ;;  %v2172_v6 = vor.u32 %v2975_v61, %v2169_v62 }
  0x1f   :  { %762 = vmatpush.bf16.msra.mxu3 %v2320_v26  ;;  %v2479_v4 = vld [vmem:[%s4705_s1 + $0x2d0] sm:$0xf]  ;;  %v3054_v5 = vld [vmem:[%s4705_s1 + $0x2d4] sm:$0xf0]  ;;  %v2236_v7 = vor.u32 %v2991_v63, %v2233_v1  ;;  %v2416_v8 = vor.u32 %v3038_v3, %v2415_v2  ;;  %v2973_v9 = vld [vmem:[%s4705_s1 + $0x54] sm:$0xf] }
  0x20   :  { %706 = vmatpush.bf16.msra.mxu0 %v2120_v34  ;;  %v2161_v10 = vld [vmem:[%s4705_s1 + $0x58] sm:$0xf0]  ;;  %v2989_v11 = vld [vmem:[%s4705_s1 + $0xd4] sm:$0xf]  ;;  %v2480_v12 = vor.u32 %v3054_v5, %v2479_v4  ;;  %v2407_v14 = vld [vmem:[%s4705_s1 + $0x240] sm:$0xf] }
  0x21   :  { %725 = vmatpush.bf16.msra.mxu1 %v2184_v38  ;;  %v2225_v13 = vld [vmem:[%s4705_s1 + $0xd8] sm:$0xf0]  ;;  %v3036_v15 = vld [vmem:[%s4705_s1 + $0x244] sm:$0xf0]  ;;  %v2471_v16 = vld [vmem:[%s4705_s1 + $0x2c0] sm:$0xf]  ;;  %v2164_v18 = vor.u32 %v2973_v9, %v2161_v10 }
  0x22   :  { %744 = vmatpush.bf16.msra.mxu2 %v2248_v39  ;;  %v3052_v17 = vld [vmem:[%s4705_s1 + $0x2c4] sm:$0xf0]  ;;  %v2971_v19 = vld [vmem:[%s4705_s1 + $0x44] sm:$0xf]  ;;  %v2153_v20 = vld [vmem:[%s4705_s1 + $0x48] sm:$0xf0]  ;;  %v2228_v22 = vor.u32 %v2989_v11, %v2225_v13  ;;  %v2408_v23 = vor.u32 %v3036_v15, %v2407_v14 }
  0x23   :  { %763 = vmatpush.bf16.msra.mxu3 %v2312_v43  ;;  %707 = vmatmul.bf16.vlgmr.msra.gmra.mxu0 %v3489_v48  ;;  %v2987_v21 = vld [vmem:[%s4705_s1 + $0xc4] sm:$0xf]  ;;  %v2217_v24 = vld [vmem:[%s4705_s1 + $0xc8] sm:$0xf0]  ;;  %v2095_v25 = vld [vmem:[%s4706_s0 + $0x30] sm:$0xf]  ;;  %v2472_v27 = vor.u32 %v3052_v17, %v2471_v16  ;;  %v2156_v35 = vor.u32 %v2971_v19, %v2153_v20 }
  0x24   :  { %775 = vmatpush.bf16.msrb.mxu0 %v2432_v44  ;;  %726 = vmatmul.bf16.vlgmr.msra.gmra.mxu1 %v3500_v53  ;;  %v2960_v26 = vld [vmem:[%s4706_s0 + $0x44] sm:$0xf0]  ;;  %v2957_v28 = vld [vmem:[%s4706_s0 + $0x34] sm:$0xf]  ;;  %v2097_v29 = vld [vmem:[%s4706_s0 + $0x48] sm:$0xf0]  ;;  %v2220_v39 = vor.u32 %v2987_v21, %v2217_v24 }
  0x25   :  { %794 = vmatpush.bf16.msrb.mxu1 %v2496_v49  ;;  %745 = vmatmul.bf16.vlgmr.msra.gmra.mxu2 %v3502_v54  ;;  %v2399_v30 = vld [vmem:[%s4705_s1 + $0x230] sm:$0xf]  ;;  %v3034_v31 = vld [vmem:[%s4705_s1 + $0x234] sm:$0xf0]  ;;  %v2958_v37 = vld [vmem:[%s4706_s0 + $0x3c] sm:$0xf]  ;;  %v3621_v44 = vor.u32 %v2960_v26, %v2095_v25  ;;  %v3632_v50 = vor.u32 %v2957_v28, %v2097_v29 }
  0x26   :  { %764 = vmatmul.bf16.vlgmr.msra.gmra.mxu3 %v3510_v57  ;;  %813 = vmatpush.bf16.msrb.mxu2 %v2180_v58  ;;  %v2103_v32 = vld [vmem:[%s4706_s0 + $0x38] sm:$0xf]  ;;  %v2463_v33 = vld [vmem:[%s4705_s1 + $0x2b0] sm:$0xf]  ;;  %v2105_v38 = vld [vmem:[%s4706_s0 + $0x50] sm:$0xf0]  ;;  %v2400_v40 = vor.u32 %v3034_v31, %v2399_v30 }
  0x27   :  { %832 = vmatpush.bf16.msrb.mxu3 %v2244_v59  ;;  %v3050_v34 = vld [vmem:[%s4705_s1 + $0x2b4] sm:$0xf0]  ;;  %v2961_v36 = vld [vmem:[%s4706_s0 + $0x4c] sm:$0xf0]  ;;  %v2969_v41 = vld [vmem:[%s4705_s1 + $0x34] sm:$0xf]  ;;  %v3642_v56 = vor.u32 %v2958_v37, %v2105_v38 }
  0x28   :  { %776 = vmatpush.bf16.msrb.mxu0 %v2424_v60  ;;  %v2145_v42 = vld [vmem:[%s4705_s1 + $0x38] sm:$0xf0]  ;;  %v2985_v43 = vld [vmem:[%s4705_s1 + $0xb4] sm:$0xf]  ;;  %v2464_v45 = vor.u32 %v3050_v34, %v2463_v33  ;;  %v2391_v47 = vld [vmem:[%s4705_s1 + $0x220] sm:$0xf]  ;;  %v3634_v51 = vor.u32 %v2961_v36, %v2103_v32 }
  0x29   :  { %795 = vmatpush.bf16.msrb.mxu1 %v2488_v0  ;;  %v2209_v46 = vld [vmem:[%s4705_s1 + $0xb8] sm:$0xf0]  ;;  %v3032_v49 = vld [vmem:[%s4705_s1 + $0x224] sm:$0xf0]  ;;  %v2455_v52 = vld [vmem:[%s4705_s1 + $0x2a0] sm:$0xf]  ;;  %v2148_v58 = vor.u32 %v2969_v41, %v2145_v42 }
  0x2a   :  { %814 = vmatpush.bf16.msrb.mxu2 %v2172_v6  ;;  %v3048_v55 = vld [vmem:[%s4705_s1 + $0x2a4] sm:$0xf0]  ;;  %v2212_v59 = vor.u32 %v2985_v43, %v2209_v46  ;;  %v2392_v60 = vor.u32 %v3032_v49, %v2391_v47  ;;  %v2967_v61 = vld [vmem:[%s4705_s1 + $0x24] sm:$0xf]  ;;  %v2137_v62 = vld [vmem:[%s4705_s1 + $0x28] sm:$0xf0] }
  0x2b   :  { %833 = vmatpush.bf16.msrb.mxu3 %v2236_v7  ;;  %v2983_v63 = vld [vmem:[%s4705_s1 + $0xa4] sm:$0xf]  ;;  %v2456_v0 = vor.u32 %v3048_v55, %v2455_v52  ;;  %v2201_v1 = vld [vmem:[%s4705_s1 + $0xa8] sm:$0xf0]  ;;  %v2383_v2 = vld [vmem:[%s4705_s1 + $0x210] sm:$0xf]  ;;  %v2140_v6 = vor.u32 %v2967_v61, %v2137_v62 }
  0x2c   :  { %777 = vmatpush.bf16.msrb.mxu0 %v2416_v8  ;;  %v3030_v3 = vld [vmem:[%s4705_s1 + $0x214] sm:$0xf0]  ;;  %v2447_v4 = vld [vmem:[%s4705_s1 + $0x290] sm:$0xf]  ;;  %v2965_v7 = vld [vmem:[%s4705_s1 + $0x14] sm:$0xf]  ;;  %v2204_v8 = vor.u32 %v2983_v63, %v2201_v1 }
  0x2d   :  { %796 = vmatpush.bf16.msrb.mxu1 %v2480_v12  ;;  %v3046_v5 = vld [vmem:[%s4705_s1 + $0x294] sm:$0xf0]  ;;  %v2384_v9 = vor.u32 %v3030_v3, %v2383_v2  ;;  %v2129_v10 = vld [vmem:[%s4705_s1 + $0x18] sm:$0xf0]  ;;  %v2981_v11 = vld [vmem:[%s4705_s1 + $0x94] sm:$0xf] }
  0x2e   :  { %815 = vmatpush.bf16.msrb.mxu2 %v2164_v18  ;;  %v2193_v12 = vld [vmem:[%s4705_s1 + $0x98] sm:$0xf0]  ;;  %v2448_v13 = vor.u32 %v3046_v5, %v2447_v4  ;;  %v2375_v14 = vld [vmem:[%s4705_s1 + $0x200] sm:$0xf]  ;;  %v3028_v15 = vld [vmem:[%s4705_s1 + $0x204] sm:$0xf0]  ;;  %v2132_v20 = vor.u32 %v2965_v7, %v2129_v10 }
  0x2f   :  { %834 = vmatpush.bf16.msrb.mxu3 %v2228_v22  ;;  %v2439_v16 = vld [vmem:[%s4705_s1 + $0x280] sm:$0xf]  ;;  %v3044_v17 = vld [vmem:[%s4705_s1 + $0x284] sm:$0xf0]  ;;  %v3009_v18 = vld [vmem:[%s4705_s1 + $0x174] sm:$0xf]  ;;  %v2196_v24 = vor.u32 %v2981_v11, %v2193_v12  ;;  %v2376_v25 = vor.u32 %v3028_v15, %v2375_v14 }
  0x30   :  { %778 = vmatpush.bf16.msrb.mxu0 %v2408_v23  ;;  %v2305_v19 = vld [vmem:[%s4705_s1 + $0x178] sm:$0xf0]  ;;  %v2963_v21 = vld [vmem:[%s4705_s1 + $0x4] sm:$0xf]  ;;  %v3025_v22 = vld [vmem:[%s4705_s1 + $0x1f4] sm:$0xf]  ;;  %v2440_v29 = vor.u32 %v3044_v17, %v2439_v16 }
  0x31   :  { %797 = vmatpush.bf16.msrb.mxu1 %v2472_v27  ;;  %v2369_v23 = vld [vmem:[%s4705_s1 + $0x1f8] sm:$0xf0]  ;;  %v2121_v26 = vld [vmem:[%s4705_s1 + $0x8] sm:$0xf0]  ;;  %v2979_v27 = vld [vmem:[%s4705_s1 + $0x84] sm:$0xf]  ;;  %v2308_v31 = vor.u32 %v3009_v18, %v2305_v19 }
  0x32   :  { %816 = vmatpush.bf16.msrb.mxu2 %v2156_v35  ;;  %v2185_v28 = vld [vmem:[%s4705_s1 + $0x88] sm:$0xf0]  ;;  %v2087_v30 = vld [vmem:[%s4706_s0 + $0x10] sm:$0xf]  ;;  %v3041_v32 = vld [vmem:[%s4705_s1 + $0x274] sm:$0xf]  ;;  %v2372_v35 = vor.u32 %v3025_v22, %v2369_v23  ;;  %v2124_v38 = vor.u32 %v2963_v21, %v2121_v26 }
  0x33   :  { %835 = vmatpush.bf16.msrb.mxu3 %v2220_v39  ;;  %712 = vmatmul.bf16.gmra.mxu0 %v3621_v44  ;;  %v2433_v33 = vld [vmem:[%s4705_s1 + $0x278] sm:$0xf0]  ;;  %v2956_v34 = vld [vmem:[%s4706_s0 + $0x24] sm:$0xf0]  ;;  %v3057_v36 = vld [vmem:[%s4705_s1 + $0x2f4] sm:$0xf]  ;;  %v2188_v41 = vor.u32 %v2979_v27, %v2185_v28 }
  0x34   :  { %779 = vmatpush.bf16.msrb.mxu0 %v2400_v40  ;;  %731 = vmatmul.bf16.gmra.mxu1 %v3632_v50  ;;  %v2497_v37 = vld [vmem:[%s4705_s1 + $0x2f8] sm:$0xf0]  ;;  %v2953_v39 = vld [vmem:[%s4706_s0 + $0x14] sm:$0xf]  ;;  %v2089_v40 = vld [vmem:[%s4706_s0 + $0x28] sm:$0xf0]  ;;  %v2436_v42 = vor.u32 %v3041_v32, %v2433_v33  ;;  %v3753_v47 = vor.u32 %v2956_v34, %v2087_v30 }
  0x35   :  { %798 = vmatpush.bf16.msrb.mxu1 %v2464_v45  ;;  %750 = vmatmul.bf16.gmra.mxu2 %v3634_v51  ;;  %v3007_v43 = vld [vmem:[%s4705_s1 + $0x164] sm:$0xf]  ;;  %v2297_v45 = vld [vmem:[%s4705_s1 + $0x168] sm:$0xf0]  ;;  %v2500_v49 = vor.u32 %v3057_v36, %v2497_v37  ;;  %v3005_v1 = vld [vmem:[%s4705_s1 + $0x154] sm:$0xf] }
  0x36   :  { %769 = vmatmul.bf16.gmra.mxu3 %v3642_v56  ;;  %817 = vmatpush.bf16.msrb.mxu2 %v2148_v58  ;;  %v3023_v46 = vld [vmem:[%s4705_s1 + $0x1e4] sm:$0xf]  ;;  %v2361_v52 = vld [vmem:[%s4705_s1 + $0x1e8] sm:$0xf0]  ;;  %v2300_v62 = vor.u32 %v3007_v43, %v2297_v45  ;;  %v2289_v2 = vld [vmem:[%s4705_s1 + $0x158] sm:$0xf0] }
  0x37   :  { %836 = vmatpush.bf16.msrb.mxu3 %v2212_v59  ;;  %v3039_v55 = vld [vmem:[%s4705_s1 + $0x264] sm:$0xf]  ;;  %v2425_v58 = vld [vmem:[%s4705_s1 + $0x268] sm:$0xf0]  ;;  %v3764_v59 = vor.u32 %v2953_v39, %v2089_v40  ;;  %v2364_v63 = vor.u32 %v3023_v46, %v2361_v52  ;;  %v3021_v3 = vld [vmem:[%s4705_s1 + $0x1d4] sm:$0xf]  ;;  %v2292_v10 = vor.u32 %v3005_v1, %v2289_v2 }
  0x38   :  { %780 = vmatpush.bf16.msrb.mxu0 %v2392_v60  ;;  %v3055_v60 = vld [vmem:[%s4705_s1 + $0x2e4] sm:$0xf]  ;;  %v2489_v61 = vld [vmem:[%s4705_s1 + $0x2e8] sm:$0xf0]  ;;  %v2353_v5 = vld [vmem:[%s4705_s1 + $0x1d8] sm:$0xf0] }
  0x39   :  { %799 = vmatpush.bf16.msrb.mxu1 %v2456_v0  ;;  %v2428_v0 = vor.u32 %v3039_v55, %v2425_v58  ;;  %v2492_v4 = vor.u32 %v3055_v60, %v2489_v61  ;;  %v2417_v7 = vld [vmem:[%s4705_s1 + $0x258] sm:$0xf0]  ;;  %v2356_v11 = vor.u32 %v3021_v3, %v2353_v5  ;;  %v3019_v14 = vld [vmem:[%s4705_s1 + $0x1c4] sm:$0xf]  ;;  %v2345_v15 = vld [vmem:[%s4705_s1 + $0x1c8] sm:$0xf0] }
  0x3a   :  { %818 = vmatpush.bf16.msrb.mxu2 %v2140_v6  ;;  %v3037_v6 = vld [vmem:[%s4705_s1 + $0x254] sm:$0xf]  ;;  %v3035_v16 = vld [vmem:[%s4705_s1 + $0x244] sm:$0xf]  ;;  %v2409_v17 = vld [vmem:[%s4705_s1 + $0x248] sm:$0xf0]  ;;  %v2348_v21 = vor.u32 %v3019_v14, %v2345_v15 }
  0x3b   :  { %837 = vmatpush.bf16.msrb.mxu3 %v2204_v8  ;;  %v3053_v8 = vld [vmem:[%s4705_s1 + $0x2d4] sm:$0xf]  ;;  %v2420_v12 = vor.u32 %v3037_v6, %v2417_v7  ;;  %v3051_v18 = vld [vmem:[%s4705_s1 + $0x2c4] sm:$0xf]  ;;  %v2473_v19 = vld [vmem:[%s4705_s1 + $0x2c8] sm:$0xf0]  ;;  %v2412_v22 = vor.u32 %v3035_v16, %v2409_v17 }
  0x3c   :  { %781 = vmatpush.bf16.msrb.mxu0 %v2384_v9  ;;  %v2481_v9 = vld [vmem:[%s4705_s1 + $0x2d8] sm:$0xf0]  ;;  %v2111_v23 = vld [vmem:[%s4706_s0 + $0x40] sm:$0xf]  ;;  %v3017_v26 = vld [vmem:[%s4705_s1 + $0x1b4] sm:$0xf]  ;;  %v2476_v27 = vor.u32 %v3051_v18, %v2473_v19 }
  0x3d   :  { %800 = vmatpush.bf16.msrb.mxu1 %v2448_v13  ;;  %v2281_v13 = vld [vmem:[%s4705_s1 + $0x148] sm:$0xf0]  ;;  %v2337_v28 = vld [vmem:[%s4705_s1 + $0x1b8] sm:$0xf0]  ;;  %v3049_v32 = vld [vmem:[%s4705_s1 + $0x2b4] sm:$0xf] }
  0x3e   :  { %819 = vmatpush.bf16.msrb.mxu2 %v2132_v20  ;;  %v2401_v30 = vld [vmem:[%s4705_s1 + $0x238] sm:$0xf0]  ;;  %v2959_v34 = vld [vmem:[%s4706_s0 + $0x44] sm:$0xf]  ;;  %v2340_v37 = vor.u32 %v3017_v26, %v2337_v28  ;;  %v2265_v40 = vld [vmem:[%s4705_s1 + $0x128] sm:$0xf0] }
  0x3f   :  { %838 = vmatpush.bf16.msrb.mxu3 %v2196_v24  ;;  %v3001_v24 = vld [vmem:[%s4705_s1 + $0x134] sm:$0xf]  ;;  %v2465_v33 = vld [vmem:[%s4705_s1 + $0x2b8] sm:$0xf0]  ;;  %v2999_v39 = vld [vmem:[%s4705_s1 + $0x124] sm:$0xf] }
  0x40   :  { %782 = vmatpush.bf16.msrb.mxu0 %v2376_v25  ;;  %v2273_v25 = vld [vmem:[%s4705_s1 + $0x138] sm:$0xf0]  ;;  %v2468_v43 = vor.u32 %v3049_v32, %v2465_v33  ;;  %v2329_v45 = vld [vmem:[%s4705_s1 + $0x1a8] sm:$0xf0]  ;;  %v3031_v46 = vld [vmem:[%s4705_s1 + $0x224] sm:$0xf]  ;;  %v2268_v60 = vor.u32 %v2999_v39, %v2265_v40 }
  0x41   :  { %801 = vmatpush.bf16.msrb.mxu1 %v2440_v29  ;;  %v3033_v29 = vld [vmem:[%s4705_s1 + $0x234] sm:$0xf]  ;;  %v2276_v36 = vor.u32 %v3001_v24, %v2273_v25  ;;  %v3047_v55 = vld [vmem:[%s4705_s1 + $0x2a4] sm:$0xf]  ;;  %v2457_v58 = vld [vmem:[%s4705_s1 + $0x2a8] sm:$0xf0] }
  0x42   :  { %820 = vmatpush.bf16.msrb.mxu2 %v2124_v38  ;;  %v2404_v38 = vor.u32 %v3033_v29, %v2401_v30  ;;  %v3013_v1 = vld [vmem:[%s4705_s1 + $0x194] sm:$0xf]  ;;  %v2460_v2 = vor.u32 %v3047_v55, %v2457_v58  ;;  %v2321_v3 = vld [vmem:[%s4705_s1 + $0x198] sm:$0xf0]  ;;  %v2377_v14 = vld [vmem:[%s4705_s1 + $0x208] sm:$0xf0] }
  0x43   :  { %839 = vmatpush.bf16.msrb.mxu3 %v2188_v41  ;;  %783 = vmatmul.bf16.vlgmr.msrb.gmra.mxu0 %v3753_v47  ;;  %v3015_v41 = vld [vmem:[%s4705_s1 + $0x1a4] sm:$0xf]  ;;  %v2385_v5 = vld [vmem:[%s4705_s1 + $0x218] sm:$0xf0]  ;;  %v3045_v6 = vld [vmem:[%s4705_s1 + $0x294] sm:$0xf] }
  0x44   :  { %851 = vmatpush.bf16.msra.mxu0 %v2308_v31  ;;  %802 = vmatmul.bf16.vlgmr.msrb.gmra.mxu1 %v3764_v59  ;;  %v2962_v31 = vld [vmem:[%s4706_s0 + $0x54] sm:$0xf0]  ;;  %v2332_v61 = vor.u32 %v3015_v41, %v2329_v45  ;;  %v2449_v7 = vld [vmem:[%s4705_s1 + $0x298] sm:$0xf0]  ;;  %v2441_v15 = vld [vmem:[%s4705_s1 + $0x288] sm:$0xf0] }
  0x45   :  { %870 = vmatpush.bf16.msra.mxu1 %v2372_v35  ;;  %821 = vmatmul.bf16.vlgmr.msrb.gmra.mxu2 %v3489_v48  ;;  %v3003_v48 = vld [vmem:[%s4705_s1 + $0x144] sm:$0xf]  ;;  %v2113_v35 = vld [vmem:[%s4706_s0 + $0x58] sm:$0xf0]  ;;  %v2601_v24 = vld [vmem:[%s4707_s4 + $0xd0] sm:$0xf0] }
  0x46   :  { %889 = vmatpush.bf16.msra.mxu2 %v2436_v42  ;;  %840 = vmatmul.bf16.vlgmr.msrb.gmra.mxu3 %v3500_v53  ;;  %v2484_v53 = vor.u32 %v3053_v8, %v2481_v9  ;;  %v2284_v20 = vor.u32 %v3003_v48, %v2281_v13  ;;  %v2112_v42 = vor.u32 %v2962_v31, %v2111_v23  ;;  %v2313_v48 = vld [vmem:[%s4705_s1 + $0x188] sm:$0xf0]  ;;  %v3027_v13 = vld [vmem:[%s4705_s1 + $0x204] sm:$0xf]  ;;  %v2583_v26 = vld [vmem:[%s4707_s4 + $0xa0] sm:$0xf] }
  0x47   :  { %908 = vmatpush.bf16.msra.mxu3 %v2500_v49  ;;  %v2393_v49 = vld [vmem:[%s4705_s1 + $0x228] sm:$0xf0]  ;;  %v2116_v52 = vor.u32 %v2959_v34, %v2113_v35  ;;  %v2324_v9 = vor.u32 %v3013_v1, %v2321_v3  ;;  %v2380_v18 = vor.u32 %v3027_v13, %v2377_v14  ;;  %v3079_v28 = vld [vmem:[%s4707_s4 + $0xa4] sm:$0xf]  ;;  %v2585_v30 = vld [vmem:[%s4707_s4 + $0xb0] sm:$0xf0] }
  0x48   :  { %852 = vmatpush.bf16.msra.mxu0 %v2300_v62  ;;  %v2396_v62 = vor.u32 %v3031_v46, %v2393_v49  ;;  %v2588_v31 = vor.u32 %v3079_v28, %v2585_v30  ;;  %v2567_v32 = vld [vmem:[%s4707_s4 + $0x80] sm:$0xf]  ;;  %v3077_v33 = vld [vmem:[%s4707_s4 + $0x8c] sm:$0xf0]  ;;  %v3075_v34 = vld [vmem:[%s4707_s4 + $0x84] sm:$0xf] }
  0x49   :  { %871 = vmatpush.bf16.msra.mxu1 %v2364_v63  ;;  %v2997_v63 = vld [vmem:[%s4705_s1 + $0x114] sm:$0xf]  ;;  %v2568_v35 = vor.u32 %v3077_v33, %v2567_v32  ;;  %v3073_v39 = vld [vmem:[%s4707_s4 + $0x6c] sm:$0xf0]  ;;  %v3071_v40 = vld [vmem:[%s4707_s4 + $0x64] sm:$0xf] }
  0x4a   :  { %890 = vmatpush.bf16.msra.mxu2 %v2428_v0  ;;  %v2257_v0 = vld [vmem:[%s4705_s1 + $0x118] sm:$0xf0]  ;;  %v2535_v49 = vld [vmem:[%s4707_s4 + $0x40] sm:$0xf]  ;;  %v3067_v55 = vld [vmem:[%s4707_s4 + $0x44] sm:$0xf] }
  0x4b   :  { %909 = vmatpush.bf16.msra.mxu3 %v2492_v4  ;;  %v3029_v4 = vld [vmem:[%s4705_s1 + $0x214] sm:$0xf]  ;;  %v2260_v8 = vor.u32 %v2997_v63, %v2257_v0  ;;  %v2519_v63 = vld [vmem:[%s4707_s4 + $0x20] sm:$0xf]  ;;  %v3065_v0 = vld [vmem:[%s4707_s4 + $0x2c] sm:$0xf0] }
  0x4c   :  { %853 = vmatpush.bf16.msra.mxu0 %v2292_v10  ;;  %v2388_v10 = vor.u32 %v3029_v4, %v2385_v5  ;;  %v3063_v1 = vld [vmem:[%s4707_s4 + $0x24] sm:$0xf]  ;;  %v2520_v4 = vor.u32 %v3065_v0, %v2519_v63  ;;  %v2521_v5 = vld [vmem:[%s4707_s4 + $0x30] sm:$0xf0]  ;;  %v3090_v13 = vld [vmem:[%s4707_s4 + $0xf4] sm:$0xf0] }
  0x4d   :  { %872 = vmatpush.bf16.msra.mxu1 %v2356_v11  ;;  %v2249_v11 = vld [vmem:[%s4705_s1 + $0x108] sm:$0xf0]  ;;  %v3082_v30 = vld [vmem:[%s4707_s4 + $0xb4] sm:$0xf0] }
  0x4e   :  { %891 = vmatpush.bf16.msra.mxu2 %v2420_v12  ;;  %v3011_v12 = vld [vmem:[%s4705_s1 + $0x184] sm:$0xf]  ;;  %v3088_v14 = vld [vmem:[%s4707_s4 + $0xec] sm:$0xf] }
  0x4f   :  { %910 = vmatpush.bf16.msra.mxu3 %v2484_v53  ;;  %v3043_v53 = vld [vmem:[%s4705_s1 + $0x284] sm:$0xf]  ;;  %v2316_v17 = vor.u32 %v3011_v12, %v2313_v48  ;;  %v2623_v48 = vld [vmem:[%s4707_s4 + $0xe8] sm:$0xf] }
  0x50   :  { %854 = vmatpush.bf16.msra.mxu0 %v2284_v20  ;;  %v2444_v19 = vor.u32 %v3043_v53, %v2441_v15  ;;  %v2615_v20 = vld [vmem:[%s4707_s4 + $0xe0] sm:$0xf] }
  0x51   :  { %873 = vmatpush.bf16.msra.mxu1 %v2348_v21  ;;  %v3085_v21 = vld [vmem:[%s4707_s4 + $0xcc] sm:$0xf0] }
  0x52   :  { %892 = vmatpush.bf16.msra.mxu2 %v2412_v22  ;;  %v3083_v22 = vld [vmem:[%s4707_s4 + $0xc4] sm:$0xf] }
  0x53   :  { %911 = vmatpush.bf16.msra.mxu3 %v2476_v27  ;;  %788 = vmatmul.bf16.gmra.mxu0 %v2112_v42  ;;  %v2604_v25 = vor.u32 %v3083_v22, %v2601_v24  ;;  %v3081_v27 = vld [vmem:[%s4707_s4 + $0xac] sm:$0xf0]  ;;  %v2743_v22 = vld [vmem:[%s4707_s4 + $0x1e0] sm:$0xf]  ;;  %v3119_v24 = vld [vmem:[%s4707_s4 + $0x1e4] sm:$0xf] }
  0x54   :  { %855 = vmatpush.bf16.msra.mxu0 %v2276_v36  ;;  %807 = vmatmul.bf16.gmra.mxu1 %v2116_v52  ;;  %v2584_v29 = vor.u32 %v3081_v27, %v2583_v26  ;;  %v2569_v36 = vld [vmem:[%s4707_s4 + $0x90] sm:$0xf0] }
  0x55   :  { %874 = vmatpush.bf16.msra.mxu1 %v2340_v37  ;;  %826 = vmatmul.bf16.gmra.mxu2 %v3621_v44  ;;  %v2995_v44 = vld [vmem:[%s4705_s1 + $0x104] sm:$0xf]  ;;  %v2572_v37 = vor.u32 %v3075_v34, %v2569_v36  ;;  %v2745_v26 = vld [vmem:[%s4707_s4 + $0x1f0] sm:$0xf0] }
  0x56   :  { %893 = vmatpush.bf16.msra.mxu2 %v2404_v38  ;;  %845 = vmatmul.bf16.gmra.mxu3 %v3632_v50  ;;  %v2452_v50 = vor.u32 %v3045_v6, %v2449_v7  ;;  %v2252_v16 = vor.u32 %v2995_v44, %v2249_v11  ;;  %v2551_v38 = vld [vmem:[%s4707_s4 + $0x60] sm:$0xf]  ;;  %v2524_v7 = vor.u32 %v3063_v1, %v2521_v5  ;;  %v2505_v11 = vld [vmem:[%s4707_s4 + $0x10] sm:$0xf0]  ;;  %v3111_v5 = vld [vmem:[%s4707_s4 + $0x1a4] sm:$0xf] }
  0x57   :  { %912 = vmatpush.bf16.msra.mxu3 %v2468_v43  ;;  %v2553_v43 = vld [vmem:[%s4707_s4 + $0x70] sm:$0xf0]  ;;  %v2748_v28 = vor.u32 %v3119_v24, %v2745_v26  ;;  %v2711_v1 = vld [vmem:[%s4707_s4 + $0x1a0] sm:$0xf] }
  0x58   :  { %856 = vmatpush.bf16.msra.mxu0 %v2268_v60  ;;  %v2556_v46 = vor.u32 %v3071_v40, %v2553_v43  ;;  %v2537_v60 = vld [vmem:[%s4707_s4 + $0x50] sm:$0xf0]  ;;  %v3117_v40 = vld [vmem:[%s4707_s4 + $0x1cc] sm:$0xf0] }
  0x59   :  { %875 = vmatpush.bf16.msra.mxu1 %v2332_v61  ;;  %v2540_v61 = vor.u32 %v3067_v55, %v2537_v60  ;;  %v3076_v55 = vld [vmem:[%s4707_s4 + $0x8c] sm:$0xf]  ;;  %v2577_v60 = vld [vmem:[%s4707_s4 + $0x98] sm:$0xf0] }
  0x5a   :  { %894 = vmatpush.bf16.msra.mxu2 %v2396_v62  ;;  %v2580_v0 = vor.u32 %v3076_v55, %v2577_v60  ;;  %v2663_v60 = vld [vmem:[%s4707_s4 + $0x140] sm:$0xf] }
  0x5b   :  { %913 = vmatpush.bf16.msra.mxu3 %v2460_v2 }
  0x5c   :  { %857 = vmatpush.bf16.msra.mxu0 %v2260_v8  ;;  %v2503_v8 = vld [vmem:[%s4707_s4] sm:$0xf] }
  0x5d   :  { %876 = vmatpush.bf16.msra.mxu1 %v2324_v9  ;;  %v3061_v9 = vld [vmem:[%s4707_s4 + $0xc] sm:$0xf0] }
  0x5e   :  { %895 = vmatpush.bf16.msra.mxu2 %v2388_v10  ;;  %v3059_v10 = vld [vmem:[%s4707_s4 + $0x4] sm:$0xf]  ;;  %v2504_v44 = vor.u32 %v3061_v9, %v2503_v8  ;;  %v2559_v9 = vld [vmem:[%s4707_s4 + $0x68] sm:$0xf] }
  0x5f   :  { %914 = vmatpush.bf16.msra.mxu3 %v2452_v50  ;;  %v2508_v12 = vor.u32 %v3059_v10, %v2505_v11  ;;  %v3074_v10 = vld [vmem:[%s4707_s4 + $0x74] sm:$0xf0] }
  0x60   :  { %858 = vmatpush.bf16.msra.mxu0 %v2252_v16  ;;  %v2624_v16 = vor.u32 %v3090_v13, %v2623_v48  ;;  %v2560_v48 = vor.u32 %v3074_v10, %v2559_v9  ;;  %v2561_v13 = vld [vmem:[%s4707_s4 + $0x78] sm:$0xf0] }
  0x61   :  { %877 = vmatpush.bf16.msra.mxu1 %v2316_v17  ;;  %v2625_v17 = vld [vmem:[%s4707_s4 + $0xf8] sm:$0xf0] }
  0x62   :  { %896 = vmatpush.bf16.msra.mxu2 %v2380_v18  ;;  %v4069_v18 = vld [vmem:[%s4708_s2] sm:$0x3]  ;;  %v2513_v10 = vld [vmem:[%s4707_s4 + $0x18] sm:$0xf0] }
  0x63   :  { %915 = vmatpush.bf16.msra.mxu3 %v2444_v19  ;;  %859 = vmatmul.bf16.vlgmr.msra.gmra.mxu0 %v3502_v54  ;;  %v3089_v54 = vld [vmem:[%s4707_s4 + $0xec] sm:$0xf0] }
  0x64   :  { %878 = vmatmul.bf16.vlgmr.msra.gmra.mxu1 %v3510_v57  ;;  %v3087_v57 = vld [vmem:[%s4707_s4 + $0xe4] sm:$0xf] }
  0x65   :  { %897 = vmatmul.bf16.vlgmr.msra.gmra.mxu2 %v3753_v47  ;;  %v2616_v47 = vor.u32 %v3089_v54, %v2615_v20  ;;  %v2628_v20 = vor.u32 %v3088_v14, %v2625_v17  ;;  %v2607_v54 = vld [vmem:[%s4707_s4 + $0xc8] sm:$0xf] }
  0x66   :  { %916 = vmatmul.bf16.vlgmr.msra.gmra.mxu3 %v3764_v59  ;;  %v2599_v59 = vld [vmem:[%s4707_s4 + $0xc0] sm:$0xf] }
  0x67   :  { %1325 = vmatpush.bf16.msrb.mxu0 %v2616_v47  ;;  %v2600_v23 = vor.u32 %v3085_v21, %v2599_v59  ;;  %v3084_v47 = vld [vmem:[%s4707_s4 + $0xcc] sm:$0xf]  ;;  %v2609_v59 = vld [vmem:[%s4707_s4 + $0xd8] sm:$0xf0]  ;;  %1382 = vmatpush.bf16.msrb.mxu3 %v2748_v28  ;;  %v2679_v28 = vld [vmem:[%s4707_s4 + $0x160] sm:$0xf] }
  0x68   :  { %v2612_v21 = vor.u32 %v3084_v47, %v2609_v59  ;;  %v3107_v47 = vld [vmem:[%s4707_s4 + $0x184] sm:$0xf] }
  0x6b   :  { %1326 = vmatpush.bf16.msrb.mxu0 %v2600_v23  ;;  %v3121_v23 = vld [vmem:[%s4707_s4 + $0x1ec] sm:$0xf0] }
  0x6f   :  { %1327 = vmatpush.bf16.msrb.mxu0 %v2584_v29  ;;  %v2591_v29 = vld [vmem:[%s4707_s4 + $0xa8] sm:$0xf] }
  0x70   :  { %v2592_v34 = vor.u32 %v3082_v30, %v2591_v29  ;;  %v3105_v29 = vld [vmem:[%s4707_s4 + $0x16c] sm:$0xf0]  ;;  %v3103_v30 = vld [vmem:[%s4707_s4 + $0x164] sm:$0xf] }
  0x73   :  { %864 = vmatmul.bf16.gmra.mxu0 %v3634_v51  ;;  %v2617_v51 = vld [vmem:[%s4707_s4 + $0xf0] sm:$0xf0] }
  0x74   :  { %883 = vmatmul.bf16.gmra.mxu1 %v3642_v56  ;;  %v2620_v56 = vor.u32 %v3087_v57, %v2617_v51  ;;  %1328 = vmatpush.bf16.msrb.mxu0 %v2568_v35  ;;  %v3086_v57 = vld [vmem:[%s4707_s4 + $0xd4] sm:$0xf0]  ;;  %v4083_v51 = vperm.slane %v4069_v18, 0  ;;  %v2593_v35 = vld [vmem:[%s4707_s4 + $0xb8] sm:$0xf0] }
  0x75   :  { %902 = vmatmul.bf16.gmra.mxu2 %v2112_v42  ;;  %v2552_v42 = vor.u32 %v3073_v39, %v2551_v38  ;;  %v2727_v39 = vld [vmem:[%s4707_s4 + $0x1c0] sm:$0xf] }
  0x76   :  { %921 = vmatmul.bf16.gmra.mxu3 %v2116_v52  ;;  %1363 = vmatpush.bf16.msrb.mxu2 %v2620_v56  ;;  %v3069_v52 = vld [vmem:[%s4707_s4 + $0x4c] sm:$0xf0]  ;;  %v2608_v56 = vor.u32 %v3086_v57, %v2607_v54  ;;  %v2728_v43 = vor.u32 %v3117_v40, %v2727_v39  ;;  %v2695_v54 = vld [vmem:[%s4707_s4 + $0x180] sm:$0xf]  ;;  %v2527_v39 = vld [vmem:[%s4707_s4 + $0x28] sm:$0xf] }
  0x77   :  { %v2536_v58 = vor.u32 %v3069_v52, %v2535_v49  ;;  %v2575_v49 = vld [vmem:[%s4707_s4 + $0x88] sm:$0xf]  ;;  %v3078_v52 = vld [vmem:[%s4707_s4 + $0x94] sm:$0xf0]  ;;  %v3109_v57 = vld [vmem:[%s4707_s4 + $0x18c] sm:$0xf0] }
  0x78   :  { %1329 = vmatpush.bf16.msrb.mxu0 %v2552_v42  ;;  %v3115_v42 = vld [vmem:[%s4707_s4 + $0x1c4] sm:$0xf]  ;;  %v3066_v40 = vld [vmem:[%s4707_s4 + $0x34] sm:$0xf0] }
  0x7a   :  { %1364 = vmatpush.bf16.msrb.mxu2 %v2604_v25  ;;  %v2744_v25 = vor.u32 %v3121_v23, %v2743_v22  ;;  %v3070_v22 = vld [vmem:[%s4707_s4 + $0x54] sm:$0xf0]  ;;  %v3068_v23 = vld [vmem:[%s4707_s4 + $0x4c] sm:$0xf] }
  0x7c   :  { %1330 = vmatpush.bf16.msrb.mxu0 %v2536_v58  ;;  %1344 = vmatpush.bf16.msrb.mxu1 %v2744_v25  ;;  %v2576_v58 = vor.u32 %v3078_v52, %v2575_v49 }
  0x7e   :  { %1365 = vmatpush.bf16.msrb.mxu2 %v2588_v31  ;;  %v3080_v31 = vld [vmem:[%s4707_s4 + $0xac] sm:$0xf] }
  0x7f   :  { %v2596_v38 = vor.u32 %v3080_v31, %v2593_v35  ;;  %v2680_v31 = vor.u32 %v3105_v29, %v2679_v28 }
  0x80   :  { %1331 = vmatpush.bf16.msrb.mxu0 %v2520_v4  ;;  %1345 = vmatpush.bf16.msrb.mxu1 %v2728_v43  ;;  %v3113_v4 = vld [vmem:[%s4707_s4 + $0x1ac] sm:$0xf0] }
  0x82   :  { %1366 = vmatpush.bf16.msrb.mxu2 %v2572_v37 }
  0x84   :  { %1332 = vmatpush.bf16.msrb.mxu0 %v2504_v44  ;;  %v3072_v44 = vld [vmem:[%s4707_s4 + $0x6c] sm:$0xf] }
  0x86   :  { %1367 = vmatpush.bf16.msrb.mxu2 %v2556_v46 }
  0x88   :  { %1401 = vmatpush.bf16.msra.mxu0 %v2624_v16 }
  0x8a   :  { %1368 = vmatpush.bf16.msrb.mxu2 %v2540_v61 }
  0x8c   :  { %1402 = vmatpush.bf16.msra.mxu0 %v2608_v56  ;;  %v2696_v56 = vor.u32 %v3109_v57, %v2695_v54 }
  0x8e   :  { %1369 = vmatpush.bf16.msrb.mxu2 %v2524_v7  ;;  %v2712_v7 = vor.u32 %v3113_v4, %v2711_v1 }
  0x90   :  { %1403 = vmatpush.bf16.msra.mxu0 %v2592_v34  ;;  %1346 = vmatpush.bf16.msrb.mxu1 %v2712_v7  ;;  %v2511_v7 = vld [vmem:[%s4707_s4 + $0x8] sm:$0xf] }
  0x92   :  { %1370 = vmatpush.bf16.msrb.mxu2 %v2508_v12 }
  0x94   :  { %1404 = vmatpush.bf16.msra.mxu0 %v2576_v58  ;;  %1347 = vmatpush.bf16.msrb.mxu1 %v2696_v56 }
  0x96   :  { %1439 = vmatpush.bf16.msra.mxu2 %v2628_v20  ;;  %v2564_v20 = vor.u32 %v3072_v44, %v2561_v13 }
  0x98   :  { %1405 = vmatpush.bf16.msra.mxu0 %v2560_v48  ;;  %1348 = vmatpush.bf16.msrb.mxu1 %v2680_v31 }
  0x9a   :  { %1440 = vmatpush.bf16.msra.mxu2 %v2612_v21  ;;  %v2543_v21 = vld [vmem:[%s4707_s4 + $0x48] sm:$0xf] }
  0x9b   :  { %v2544_v24 = vor.u32 %v3070_v22, %v2543_v21  ;;  %v3091_v21 = vld [vmem:[%s4707_s4 + $0x104] sm:$0xf] }
  0x9d   :  { %1406 = vmatpush.bf16.msra.mxu0 %v2544_v24 }
  0x9e   :  { %1441 = vmatpush.bf16.msra.mxu2 %v2596_v38 }
  0xa0   :  { %v3997_v41 = vpop.f32.mrf.mxu0 }
  0xa1   :  { %v4002_v45 = vpop.f32.mrf.mxu1  ;;  %v709_v36 = vadd.f32 %v3997_v41, %v4083_v51  ;;  %v2729_v41 = vld [vmem:[%s4707_s4 + $0x1d0] sm:$0xf0] }
  0xa2   :  { %v2732_v46 = vor.u32 %v3115_v42, %v2729_v41  ;;  %1442 = vmatpush.bf16.msra.mxu2 %v2580_v0  ;;  %v3064_v42 = vld [vmem:[%s4707_s4 + $0x2c] sm:$0xf]  ;;  %v2528_v41 = vor.u32 %v3066_v40, %v2527_v39  ;;  %v2735_v39 = vld [vmem:[%s4707_s4 + $0x1c8] sm:$0xf]  ;;  %v3118_v40 = vld [vmem:[%s4707_s4 + $0x1d4] sm:$0xf0] }
  0xa3   :  { %v728_v61 = vadd.f32 %v4002_v45, %v709_v36  ;;  %v2713_v45 = vld [vmem:[%s4707_s4 + $0x1b0] sm:$0xf0] }
  0xa4   :  { %1383 = vmatpush.bf16.msrb.mxu3 %v2732_v46  ;;  %v2716_v8 = vor.u32 %v3111_v5, %v2713_v45  ;;  %v2529_v46 = vld [vmem:[%s4707_s4 + $0x38] sm:$0xf0]  ;;  %1407 = vmatpush.bf16.msra.mxu0 %v2528_v41  ;;  %v3062_v45 = vld [vmem:[%s4707_s4 + $0x14] sm:$0xf0] }
  0xa5   :  { %v2532_v58 = vor.u32 %v3064_v42, %v2529_v46  ;;  %v2512_v9 = vor.u32 %v3062_v45, %v2511_v7  ;;  %v2736_v42 = vor.u32 %v3118_v40, %v2735_v39  ;;  %v3110_v45 = vld [vmem:[%s4707_s4 + $0x194] sm:$0xf0] }
  0xa6   :  { %1443 = vmatpush.bf16.msra.mxu2 %v2564_v20 }
  0xa8   :  { %v4016_v62 = vpop.f32.mrf.mxu2  ;;  %v4029_v3 = vpop.f32.mrf.mxu0  ;;  %1384 = vmatpush.bf16.msrb.mxu3 %v2716_v8  ;;  %v3060_v8 = vld [vmem:[%s4707_s4 + $0xc] sm:$0xf]  ;;  %1408 = vmatpush.bf16.msra.mxu0 %v2512_v9 }
  0xa9   :  { %v4027_v2 = vpop.f32.mrf.mxu3  ;;  %v4034_v6 = vpop.f32.mrf.mxu1  ;;  %v711_v63 = vadd.f32 %v4029_v3, %v4083_v51  ;;  %v747_v14 = vadd.f32 %v4016_v62, %v728_v61  ;;  %v2697_v62 = vld [vmem:[%s4707_s4 + $0x190] sm:$0xf0]  ;;  %v3101_v61 = vld [vmem:[%s4707_s4 + $0x14c] sm:$0xf0]  ;;  %v2516_v13 = vor.u32 %v3060_v8, %v2513_v10  ;;  %v3108_v8 = vld [vmem:[%s4707_s4 + $0x18c] sm:$0xf] }
  0xaa   :  { %v2700_v59 = vor.u32 %v3107_v47, %v2697_v62  ;;  %v2664_v0 = vor.u32 %v3101_v61, %v2663_v60  ;;  %v3112_v60 = vld [vmem:[%s4707_s4 + $0x1ac] sm:$0xf]  ;;  %v4340_v61 = vperm.slane %v4069_v18, 1  ;;  %v2703_v18 = vld [vmem:[%s4707_s4 + $0x188] sm:$0xf] }
  0xab   :  { %v730_v16 = vadd.f32 %v4034_v6, %v711_v63  ;;  %v766_v25 = vadd.f32 %v4027_v2, %v747_v14  ;;  %v2681_v2 = vld [vmem:[%s4707_s4 + $0x170] sm:$0xf0]  ;;  %v3099_v63 = vld [vmem:[%s4707_s4 + $0x144] sm:$0xf]  ;;  %v2647_v14 = vld [vmem:[%s4707_s4 + $0x120] sm:$0xf]  ;;  %v2704_v10 = vor.u32 %v3110_v45, %v2703_v18 }
  0xac   :  { %1385 = vmatpush.bf16.msrb.mxu3 %v2700_v59  ;;  %v2684_v38 = vor.u32 %v3103_v30, %v2681_v2  ;;  %1349 = vmatpush.bf16.msrb.mxu1 %v2664_v0  ;;  %v3093_v59 = vld [vmem:[%s4707_s4 + $0x10c] sm:$0xf0]  ;;  %v2721_v0 = vld [vmem:[%s4707_s4 + $0x1b8] sm:$0xf0] }
  0xb0   :  { %v4048_v50 = vpop.f32.mrf.mxu2  ;;  %v4061_v15 = vpop.f32.mrf.mxu0  ;;  %1386 = vmatpush.bf16.msrb.mxu3 %v2684_v38 }
  0xb1   :  { %v4059_v53 = vpop.f32.mrf.mxu3  ;;  %v4071_v19 = vpop.f32.mrf.mxu1  ;;  %v749_v6 = vadd.f32 %v4048_v50, %v730_v16  ;;  %v2545_v50 = vld [vmem:[%s4707_s4 + $0x58] sm:$0xf0]  ;;  %v714_v49 = vadd.f32 %v4061_v15, %v4083_v51  ;;  %v2665_v15 = vld [vmem:[%s4707_s4 + $0x150] sm:$0xf0]  ;;  %v3097_v16 = vld [vmem:[%s4707_s4 + $0x12c] sm:$0xf0] }
  0xb2   :  { %v2548_v26 = vor.u32 %v3068_v23, %v2545_v50  ;;  %v2668_v5 = vor.u32 %v3099_v63, %v2665_v15  ;;  %v2751_v50 = vld [vmem:[%s4707_s4 + $0x1e8] sm:$0xf] }
  0xb3   :  { %v768_v34 = vadd.f32 %v4059_v53, %v749_v6  ;;  %v733_v44 = vadd.f32 %v4071_v19, %v714_v49  ;;  %v2648_v19 = vor.u32 %v3097_v16, %v2647_v14  ;;  %v2631_v6 = vld [vmem:[%s4707_s4 + $0x100] sm:$0xf]  ;;  %v2687_v14 = vld [vmem:[%s4707_s4 + $0x168] sm:$0xf]  ;;  %v3106_v16 = vld [vmem:[%s4707_s4 + $0x174] sm:$0xf0] }
  0xb4   :  { %1444 = vmatpush.bf16.msra.mxu2 %v2548_v26  ;;  %1387 = vmatpush.bf16.msrb.mxu3 %v2668_v5  ;;  %v2632_v22 = vor.u32 %v3093_v59, %v2631_v6  ;;  %v3120_v26 = vld [vmem:[%s4707_s4 + $0x1ec] sm:$0xf] }
  0xb5   :  { %1350 = vmatpush.bf16.msrb.mxu1 %v2648_v19  ;;  %v2688_v19 = vor.u32 %v3106_v16, %v2687_v14 }
  0xb8   :  { %v4100_v27 = vpop.f32.mrf.mxu2  ;;  %v4113_v33 = vpop.f32.mrf.mxu0  ;;  %1445 = vmatpush.bf16.msra.mxu2 %v2532_v58  ;;  %v3114_v58 = vld [vmem:[%s4707_s4 + $0x1b4] sm:$0xf0] }
  0xb9   :  { %v4111_v32 = vpop.f32.mrf.mxu3  ;;  %v4120_v37 = vpop.f32.mrf.mxu1  ;;  %v752_v47 = vadd.f32 %v4100_v27, %v733_v44  ;;  %v2633_v27 = vld [vmem:[%s4707_s4 + $0x110] sm:$0xf0]  ;;  %1351 = vmatpush.bf16.msrb.mxu1 %v2632_v22  ;;  %v2705_v44 = vld [vmem:[%s4707_s4 + $0x198] sm:$0xf0] }
  0xba   :  { %v2636_v23 = vor.u32 %v3091_v21, %v2633_v27 }
  0xbb   :  { %v771_v24 = vadd.f32 %v4111_v32, %v752_v47 }
  0xbc   :  { %1446 = vmatpush.bf16.msra.mxu2 %v2516_v13 }
  0xc0   :  { %v4161_v3 = vpop.f32.mrf.mxu2  ;;  %v784_v12 = vpop.f32.mrf.mxu0 }
  0xc1   :  { %v4172_v11 = vpop.f32.mrf.mxu3  ;;  %v803_v17 = vpop.f32.mrf.mxu1  ;;  %v785_v35 = vadd.f32 %v784_v12, %v766_v25  ;;  %v716_v12 = vadd.f32 %v4113_v33, %v4083_v51  ;;  %v2649_v51 = vld [vmem:[%s4707_s4 + $0x130] sm:$0xf0]  ;;  %v3122_v25 = vld [vmem:[%s4707_s4 + $0x1f4] sm:$0xf0] }
  0xc2   :  { %v2752_v28 = vor.u32 %v3122_v25, %v2751_v50  ;;  %v2657_v25 = vld [vmem:[%s4707_s4 + $0x138] sm:$0xf0] }
  0xc3   :  { %v804_v1 = vadd.f32 %v803_v17, %v785_v35  ;;  %v3095_v17 = vld [vmem:[%s4707_s4 + $0x124] sm:$0xf]  ;;  %v735_v56 = vadd.f32 %v4120_v37, %v716_v12  ;;  %v2708_v12 = vor.u32 %v3108_v8, %v2705_v44 }
  0xc4   :  { %v2652_v20 = vor.u32 %v3095_v17, %v2649_v51  ;;  %1420 = vmatpush.bf16.msra.mxu1 %v2752_v28  ;;  %v2689_v51 = vld [vmem:[%s4707_s4 + $0x178] sm:$0xf0] }
  0xc5   :  { %v754_v37 = vadd.f32 %v4161_v3, %v735_v56  ;;  %v2753_v3 = vld [vmem:[%s4707_s4 + $0x1f8] sm:$0xf0]  ;;  %v3100_v56 = vld [vmem:[%s4707_s4 + $0x14c] sm:$0xf] }
  0xc6   :  { %1388 = vmatpush.bf16.msrb.mxu3 %v2652_v20  ;;  %v2756_v31 = vor.u32 %v3120_v26, %v2753_v3  ;;  %v3102_v20 = vld [vmem:[%s4707_s4 + $0x154] sm:$0xf0] }
  0xc7   :  { %v773_v32 = vadd.f32 %v4172_v11, %v754_v37  ;;  %v3116_v11 = vld [vmem:[%s4707_s4 + $0x1cc] sm:$0xf] }
  0xc8   :  { %v4218_v36 = vpop.f32.mrf.mxu2  ;;  %v786_v53 = vpop.f32.mrf.mxu0  ;;  %1421 = vmatpush.bf16.msra.mxu1 %v2736_v42 }
  0xc9   :  { %v4229_v43 = vpop.f32.mrf.mxu3  ;;  %v787_v52 = vadd.f32 %v786_v53, %v768_v34  ;;  %v805_v55 = vpop.f32.mrf.mxu1  ;;  %v2737_v53 = vld [vmem:[%s4707_s4 + $0x1d8] sm:$0xf0]  ;;  %v823_v9 = vadd.f32 %v4218_v36, %v4340_v61  ;;  %v3104_v36 = vld [vmem:[%s4707_s4 + $0x16c] sm:$0xf] }
  0xca   :  { %1389 = vmatpush.bf16.msrb.mxu3 %v2636_v23  ;;  %v2740_v49 = vor.u32 %v3116_v11, %v2737_v53  ;;  %v2692_v47 = vor.u32 %v3104_v36, %v2689_v51  ;;  %v2655_v23 = vld [vmem:[%s4707_s4 + $0x128] sm:$0xf] }
  0xcb   :  { %v806_v4 = vadd.f32 %v805_v55, %v787_v52  ;;  %v2719_v55 = vld [vmem:[%s4707_s4 + $0x1a8] sm:$0xf]  ;;  %v842_v17 = vadd.f32 %v4229_v43, %v823_v9  ;;  %v2673_v43 = vld [vmem:[%s4707_s4 + $0x158] sm:$0xf0] }
  0xcc   :  { %v2720_v63 = vor.u32 %v3114_v58, %v2719_v55  ;;  %v2676_v37 = vor.u32 %v3100_v56, %v2673_v43  ;;  %v995_v43 = vld [vmem:[%s4709_s5] sm:$0xf] }
  0xcd   :  { %v4263_v48 = vpack.c.bf16 %v806_v4, %v804_v1  ;;  %v2724_v1 = vor.u32 %v3112_v60, %v2721_v0 }
  0xce   :  { %1458 = vmatpush.bf16.msra.mxu3 %v2756_v31  ;;  %1422 = vmatpush.bf16.msra.mxu1 %v2720_v63 }
  0xcf   :  { %1333 = vmatmul.bf16.vlgmr.msrb.gmra.mxu0 %v4263_v48  ;;  %1371 = vmatmul.bf16.vlgmr.msrb.gmra.mxu2 %v4263_v48 }
  0xd0   :  { %v4277_v33 = vpop.f32.mrf.mxu2  ;;  %v789_v57 = vpop.f32.mrf.mxu0 }
  0xd1   :  { %v4281_v54 = vpop.f32.mrf.mxu3  ;;  %v808_v62 = vpop.f32.mrf.mxu1  ;;  %v790_v29 = vadd.f32 %v789_v57, %v771_v24  ;;  %v825_v13 = vadd.f32 %v4277_v33, %v4340_v61  ;;  %v2671_v33 = vld [vmem:[%s4707_s4 + $0x148] sm:$0xf]  ;;  %v3098_v24 = vld [vmem:[%s4707_s4 + $0x134] sm:$0xf0] }
  0xd2   :  { %1459 = vmatpush.bf16.msra.mxu3 %v2740_v49  ;;  %1423 = vmatpush.bf16.msra.mxu1 %v2704_v10  ;;  %v2672_v22 = vor.u32 %v3102_v20, %v2671_v33  ;;  %v2656_v28 = vor.u32 %v3098_v24, %v2655_v23 }
  0xd3   :  { %v809_v41 = vadd.f32 %v808_v62, %v790_v29  ;;  %v844_v62 = vadd.f32 %v4281_v54, %v825_v13  ;;  %v3096_v54 = vld [vmem:[%s4707_s4 + $0x12c] sm:$0xf]  ;;  %v3094_v29 = vld [vmem:[%s4707_s4 + $0x114] sm:$0xf0] }
  0xd4   :  { %v2660_v3 = vor.u32 %v3096_v54, %v2657_v25 }
  0xd6   :  { %1460 = vmatpush.bf16.msra.mxu3 %v2724_v1  ;;  %1424 = vmatpush.bf16.msra.mxu1 %v2688_v19 }
  0xd8   :  { %v4312_v30 = vpop.f32.mrf.mxu2  ;;  %v791_v34 = vpop.f32.mrf.mxu0 }
  0xd9   :  { %v4314_v2 = vpop.f32.mrf.mxu3  ;;  %v792_v35 = vadd.f32 %v791_v34, %v773_v32  ;;  %v810_v38 = vpop.f32.mrf.mxu1  ;;  %v2639_v32 = vld [vmem:[%s4707_s4 + $0x108] sm:$0xf] }
  0xda   :  { %1461 = vmatpush.bf16.msra.mxu3 %v2708_v12  ;;  %1425 = vmatpush.bf16.msra.mxu1 %v2672_v22  ;;  %v2640_v53 = vor.u32 %v3094_v29, %v2639_v32 }
  0xdb   :  { %v811_v46 = vadd.f32 %v810_v38, %v792_v35  ;;  %v3092_v35 = vld [vmem:[%s4707_s4 + $0x10c] sm:$0xf]  ;;  %v2641_v38 = vld [vmem:[%s4707_s4 + $0x118] sm:$0xf0] }
  0xdd   :  { %v4328_v52 = vpack.c.bf16 %v811_v46, %v809_v41  ;;  %v2644_v41 = vor.u32 %v3092_v35, %v2641_v38  ;;  %v828_v46 = vadd.f32 %v4312_v30, %v4340_v61 }
  0xde   :  { %1462 = vmatpush.bf16.msra.mxu3 %v2692_v47  ;;  %1426 = vmatpush.bf16.msra.mxu1 %v2656_v28 }
  0xdf   :  { %1338 = vmatmul.bf16.gmra.mxu0 %v4328_v52  ;;  %1376 = vmatmul.bf16.gmra.mxu2 %v4328_v52 }
  0xe0   :  { %v4345_v15 = vpop.f32.mrf.mxu2  ;;  %v860_v5 = vpop.f32.mrf.mxu0 }
  0xe1   :  { %v4349_v4 = vpop.f32.mrf.mxu3  ;;  %v879_v7 = vpop.f32.mrf.mxu1  ;;  %v861_v6 = vadd.f32 %v860_v5, %v842_v17  ;;  %v830_v60 = vadd.f32 %v4345_v15, %v4340_v61 }
  0xe2   :  { %1463 = vmatpush.bf16.msra.mxu3 %v2676_v37  ;;  %1427 = vmatpush.bf16.msra.mxu1 %v2640_v53 }
  0xe3   :  { %v880_v26 = vadd.f32 %v879_v7, %v861_v6  ;;  %v849_v1 = vadd.f32 %v4349_v4, %v830_v60  ;;  %v998_v6 = vperm.slane %v995_v43, 1 }
  0xe6   :  { %1464 = vmatpush.bf16.msra.mxu3 %v2660_v3 }
  0xe8   :  { %v898_v57 = vpop.f32.mrf.mxu2  ;;  %v862_v21 = vpop.f32.mrf.mxu0 }
  0xe9   :  { %v917_v59 = vpop.f32.mrf.mxu3  ;;  %v881_v27 = vpop.f32.mrf.mxu1  ;;  %v863_v50 = vadd.f32 %v862_v21, %v844_v62  ;;  %v899_v31 = vadd.f32 %v898_v57, %v880_v26  ;;  %v997_v21 = vperm.slane %v995_v43, 0 }
  0xea   :  { %1465 = vmatpush.bf16.msra.mxu3 %v2644_v41 }
  0xeb   :  { %v882_v34 = vadd.f32 %v881_v27, %v863_v50  ;;  %v918_v49 = vadd.f32 %v917_v59, %v899_v31 }
  0xef   :  { %1409 = vmatmul.bf16.vlgmr.msra.gmra.mxu0 %v4263_v48  ;;  %1447 = vmatmul.bf16.vlgmr.msra.gmra.mxu2 %v4263_v48  ;;  %v847_v48 = vadd.f32 %v4314_v2, %v828_v46 }
  0xf0   :  { %v900_v39 = vpop.f32.mrf.mxu2  ;;  %v865_v42 = vpop.f32.mrf.mxu0 }
  0xf1   :  { %v901_v40 = vadd.f32 %v900_v39, %v882_v34  ;;  %v919_v11 = vpop.f32.mrf.mxu3  ;;  %v884_v58 = vpop.f32.mrf.mxu1  ;;  %v866_v5 = vadd.f32 %v865_v42, %v847_v48 }
  0xf3   :  { %v920_v55 = vadd.f32 %v919_v11, %v901_v40  ;;  %v885_v45 = vadd.f32 %v884_v58, %v866_v5 }
  0xf5   :  { %v928_v63 = vpack.c.bf16 %v920_v55, %v918_v49 }
  0xf7   :  { %1352 = vmatmul.bf16.vlgmr.msrb.gmra.mxu1 %v928_v63  ;;  %1390 = vmatmul.bf16.vlgmr.msrb.gmra.mxu3 %v928_v63 }
  0xf8   :  { %v903_v0 = vpop.f32.mrf.mxu2  ;;  %v867_v18 = vpop.f32.mrf.mxu0 }
  0xf9   :  { %v922_v7 = vpop.f32.mrf.mxu3  ;;  %v868_v30 = vadd.f32 %v867_v18, %v849_v1  ;;  %v886_v8 = vpop.f32.mrf.mxu1  ;;  %v904_v9 = vadd.f32 %v903_v0, %v885_v45 }
  0xfb   :  { %v887_v10 = vadd.f32 %v886_v8, %v868_v30  ;;  %v923_v15 = vadd.f32 %v922_v7, %v904_v9  ;;  %v1485_v9 = vld [vmem:[%s4710_s3] sm:$0xff] }
  0xff   :  { %1414 = vmatmul.bf16.gmra.mxu0 %v4328_v52  ;;  %1452 = vmatmul.bf16.gmra.mxu2 %v4328_v52 }
 0x100   :  { %v905_v44 = vpop.f32.mrf.mxu2 }
 0x101   :  { %v906_v61 = vadd.f32 %v905_v44, %v887_v10  ;;  %v924_v2 = vpop.f32.mrf.mxu3 }
 0x103   :  { %v925_v12 = vadd.f32 %v924_v2, %v906_v61  ;;  %v1488_v2 = vunpack.c.l.b16 %v1485_v9 }
 0x105   :  { %v930_v13 = vpack.c.bf16 %v925_v12, %v923_v15  ;;  %v1489_v15 = vunpack.c.h.b16 %v1485_v9  ;;  %v3138_v9 = vld [vmem:[%s4712_s6 + $0x74] sm:$0xf0] }
 0x107   :  { %1357 = vmatmul.bf16.gmra.mxu1 %v930_v13  ;;  %1395 = vmatmul.bf16.gmra.mxu3 %v930_v13 }
 0x117   :  { %1428 = vmatmul.bf16.vlgmr.msra.gmra.mxu1 %v928_v63  ;;  %1466 = vmatmul.bf16.vlgmr.msra.gmra.mxu3 %v928_v63 }
 0x127   :  { %1433 = vmatmul.bf16.gmra.mxu1 %v930_v13  ;;  %1471 = vmatmul.bf16.gmra.mxu3 %v930_v13 }
 0x14c   :  { %v1334_v4 = vpop.f32.mrf.mxu0 }
 0x14d   :  { %v1335_v40 = vadd.f32 %v1334_v4, %v997_v21 }
 0x152   :  { %v1372_v14 = vpop.f32.mrf.mxu2 }
 0x153   :  { %v1373_v31 = vadd.f32 %v1372_v14, %v998_v6  ;;  %v1490_v14 = vpack.c.b16 %v1488_v2, %v1488_v2  ;;  %v3137_v2 = vld [vmem:[%s4712_s6 + $0x74] sm:$0xf] }
 0x154   :  { %v1336_v16 = vpop.f32.mrf.mxu0 }
 0x155   :  { %v1337_v34 = vadd.f32 %v1336_v16, %v997_v21  ;;  %v1491_v16 = vpack.c.b16 %v1489_v15, %v1489_v15  ;;  %v2819_v15 = vld [vmem:[%s4712_s6 + $0x78] sm:$0xf0] }
 0x15a   :  { %v1374_v36 = vpop.f32.mrf.mxu2 }
 0x15b   :  { %v1375_v28 = vadd.f32 %v1374_v36, %v998_v6 }
 0x15c   :  { %v1339_v51 = vpop.f32.mrf.mxu0 }
 0x15d   :  { %v1340_v27 = vadd.f32 %v1339_v51, %v997_v21 }
 0x162   :  { %v1377_v33 = vpop.f32.mrf.mxu2 }
 0x163   :  { %v1378_v22 = vadd.f32 %v1377_v33, %v998_v6 }
 0x164   :  { %v1341_v47 = vpop.f32.mrf.mxu0 }
 0x165   :  { %v1342_v50 = vadd.f32 %v1341_v47, %v997_v21 }
 0x16a   :  { %v1379_v56 = vpop.f32.mrf.mxu2 }
 0x16b   :  { %v1380_v54 = vadd.f32 %v1379_v56, %v998_v6 }
 0x16c   :  { %v4430_v37 = vpop.f32.mrf.mxu0 }
 0x172   :  { %v1448_v24 = vpop.f32.mrf.mxu2 }
 0x174   :  { %v1353_v17 = vpop.f32.mrf.mxu1  ;;  %v1412_v58 = vpop.f32.mrf.mxu0 }
 0x175   :  { %v1354_v55 = vadd.f32 %v1353_v17, %v1335_v40  ;;  %v1000_v17 = vperm.slane %v995_v43, 3 }
 0x177   :  { %v1449_v56 = vadd.f32 %v1448_v24, %v1000_v17 }
 0x17a   :  { %v1391_v19 = vpop.f32.mrf.mxu3  ;;  %v1450_v0 = vpop.f32.mrf.mxu2 }
 0x17b   :  { %v1392_v11 = vadd.f32 %v1391_v19, %v1373_v31  ;;  %v999_v19 = vperm.slane %v995_v43, 2 }
 0x17c   :  { %v1355_v52 = vpop.f32.mrf.mxu1  ;;  %v1415_v12 = vpop.f32.mrf.mxu0 }
 0x17d   :  { %v1356_v42 = vadd.f32 %v1355_v52, %v1337_v34  ;;  %v1477_v5 = vpack.c.bf16 %v1392_v11, %v1354_v55  ;;  %v1486_v55 = vld [vmem:[%s4711_s12] sm:$0xff] }
 0x17f   :  { %v1498_v45 = vunpack.c.l.b16 %v1477_v5  ;;  %v1499_v8 = vunpack.c.h.b16 %v1477_v5 }
 0x182   :  { %v1393_v20 = vpop.f32.mrf.mxu3  ;;  %v1453_v13 = vpop.f32.mrf.mxu2 }
 0x183   :  { %v1394_v38 = vadd.f32 %v1393_v20, %v1375_v28  ;;  %v1454_v51 = vadd.f32 %v1453_v13, %v1000_v17  ;;  %v1451_v20 = vadd.f32 %v1450_v0, %v1000_v17  ;;  %v2822_v13 = vor.u32 %v3137_v2, %v2819_v15 }
 0x184   :  { %v1358_v57 = vpop.f32.mrf.mxu1  ;;  %v1417_v33 = vpop.f32.mrf.mxu0 }
 0x185   :  { %v1359_v25 = vadd.f32 %v1358_v57, %v1340_v27  ;;  %v1479_v60 = vpack.c.bf16 %v1394_v38, %v1356_v42  ;;  %v1416_v57 = vadd.f32 %v1415_v12, %v999_v19 }
 0x187   :  { %v1500_v18 = vunpack.c.l.b16 %v1479_v60  ;;  %v1501_v30 = vunpack.c.h.b16 %v1479_v60 }
 0x189   :  { %v1506_v10 = vpack.c.b16 %v1500_v18, %v1498_v45  ;;  %v1507_v44 = vpack.c.b16 %v1501_v30, %v1499_v8  ;;  %v2817_v8 = vld [vmem:[%s4712_s6 + $0x70] sm:$0xf] }
 0x18a   :  { %v1396_v62 = vpop.f32.mrf.mxu3  ;;  %v1455_v52 = vpop.f32.mrf.mxu2 }
 0x18b   :  { %v1397_v23 = vadd.f32 %v1396_v62, %v1378_v22  ;;  %v1413_v62 = vadd.f32 %v1412_v58, %v999_v19  ;;  %v1456_v21 = vadd.f32 %v1455_v52, %v1000_v17  ;;  %v3136_v17 = vld [vmem:[%s4712_s6 + $0x64] sm:$0xf0] }
 0x18c   :  { %v1360_v59 = vpop.f32.mrf.mxu1 }
 0x18d   :  { %v1481_v3 = vpack.c.bf16 %v1397_v23, %v1359_v25  ;;  %v1361_v32 = vadd.f32 %v1360_v59, %v1342_v50  ;;  %v1418_v59 = vadd.f32 %v1417_v33, %v999_v19  ;;  %v1411_v23 = vadd.f32 %v4430_v37, %v999_v19  ;;  %v2873_v19 = vld [vmem:[%s4712_s6 + $0xe0] sm:$0xf] }
 0x18f   :  { %v1502_v53 = vunpack.c.l.b16 %v1481_v3  ;;  %v1503_v41 = vunpack.c.h.b16 %v1481_v3 }
 0x192   :  { %v1398_v26 = vpop.f32.mrf.mxu3 }
 0x193   :  { %v1399_v29 = vadd.f32 %v1398_v26, %v1380_v54 }
 0x194   :  { %v4432_v35 = vpop.f32.mrf.mxu1 }
 0x195   :  { %v1483_v39 = vpack.c.bf16 %v1399_v29, %v1361_v32  ;;  %v1430_v3 = vadd.f32 %v4432_v35, %v1411_v23  ;;  %v3133_v23 = vld [vmem:[%s4712_s6 + $0x54] sm:$0xf] }
 0x197   :  { %v1504_v46 = vunpack.c.l.b16 %v1483_v39  ;;  %v1505_v49 = vunpack.c.h.b16 %v1483_v39 }
 0x199   :  { %v1508_v63 = vpack.c.b16 %v1504_v46, %v1502_v53  ;;  %v1509_v48 = vpack.c.b16 %v1505_v49, %v1503_v41 }
 0x19a   :  { %v1467_v1 = vpop.f32.mrf.mxu3 }
 0x19b   :  { %1520 = vmatpush.bf16.xpose.msrb.mxu2 %v1508_v63  ;;  %1533 = vmatpush.bf16.xpose.msrb.mxu1 %v1509_v48  ;;  %v1468_v50 = vadd.f32 %v1467_v1, %v1449_v56 }
 0x19c   :  { %v1431_v7 = vpop.f32.mrf.mxu1 }
 0x19d   :  { %v1432_v25 = vadd.f32 %v1431_v7, %v1413_v62  ;;  %v1478_v31 = vpack.c.bf16 %v1468_v50, %v1430_v3  ;;  %v2875_v62 = vld [vmem:[%s4712_s6 + $0xe8] sm:$0xf0]  ;;  %v2793_v3 = vld [vmem:[%s4712_s6 + $0x40] sm:$0xf] }
 0x19f   :  { %v1557_v37 = vunpack.c.l.b16 %v1478_v31  ;;  %v1558_v41 = vunpack.c.h.b16 %v1478_v31 }
 0x1a2   :  { %v1469_v61 = vpop.f32.mrf.mxu3 }
 0x1a3   :  { %1521 = vmatpush.bf16.xpose.msrb.mxu2 %v1506_v10  ;;  %1534 = vmatpush.bf16.xpose.msrb.mxu1 %v1507_v44  ;;  %v1470_v22 = vadd.f32 %v1469_v61, %v1451_v20  ;;  %v2881_v10 = vld [vmem:[%s4712_s6 + $0xf0] sm:$0xf]  ;;  %v2818_v44 = vor.u32 %v3138_v9, %v2817_v8  ;;  %v3154_v61 = vld [vmem:[%s4712_s6 + $0xf4] sm:$0xf0]  ;;  %v3135_v20 = vld [vmem:[%s4712_s6 + $0x64] sm:$0xf] }
 0x1a4   :  { %v1434_v4 = vpop.f32.mrf.mxu1  ;;  %v2882_v12 = vor.u32 %v3154_v61, %v2881_v10  ;;  %v3144_v8 = vld [vmem:[%s4712_s6 + $0xa4] sm:$0xf0]  ;;  %v3127_v9 = vld [vmem:[%s4712_s6 + $0x24] sm:$0xf]  ;;  %v2779_v10 = vld [vmem:[%s4712_s6 + $0x28] sm:$0xf0] }
 0x1a5   :  { %v1435_v27 = vadd.f32 %v1434_v4, %v1416_v57  ;;  %v1480_v32 = vpack.c.bf16 %v1470_v22, %v1432_v25  ;;  %v3153_v4 = vld [vmem:[%s4712_s6 + $0xf4] sm:$0xf]  ;;  %1802 = vmatpush.bf16.msrb.mxu0 %v2818_v44  ;;  %v2811_v57 = vld [vmem:[%s4712_s6 + $0x68] sm:$0xf0]  ;;  %v2865_v22 = vld [vmem:[%s4712_s6 + $0xd0] sm:$0xf] }
 0x1a6   :  { %v2814_v56 = vor.u32 %v3135_v20, %v2811_v57  ;;  %v3149_v25 = vld [vmem:[%s4712_s6 + $0xd4] sm:$0xf]  ;;  %v3143_v44 = vld [vmem:[%s4712_s6 + $0xa4] sm:$0xf]  ;;  %v2843_v61 = vld [vmem:[%s4712_s6 + $0xa8] sm:$0xf0] }
 0x1a7   :  { %v1559_v40 = vunpack.c.l.b16 %v1480_v32  ;;  %v1560_v11 = vunpack.c.h.b16 %v1480_v32  ;;  %v3132_v32 = vld [vmem:[%s4712_s6 + $0x44] sm:$0xf0] }
 0x1a9   :  { %v1565_v46 = vpack.c.b16 %v1559_v40, %v1557_v37  ;;  %v1566_v49 = vpack.c.b16 %v1560_v11, %v1558_v41  ;;  %v2859_v40 = vld [vmem:[%s4712_s6 + $0xc8] sm:$0xf0]  ;;  %v2794_v11 = vor.u32 %v3132_v32, %v2793_v3  ;;  %v2785_v37 = vld [vmem:[%s4712_s6 + $0x30] sm:$0xf]  ;;  %v3130_v41 = vld [vmem:[%s4712_s6 + $0x34] sm:$0xf0] }
 0x1aa   :  { %v1472_v36 = vpop.f32.mrf.mxu3  ;;  %1522 = vmatmul.bf16.vlgmr.msrb.gmra.mxu2 %v1490_v14  ;;  %1535 = vmatmul.bf16.vlgmr.msrb.gmra.mxu1 %v1491_v16  ;;  %v2883_v14 = vld [vmem:[%s4712_s6 + $0xf8] sm:$0xf0]  ;;  %v2809_v16 = vld [vmem:[%s4712_s6 + $0x60] sm:$0xf] }
 0x1ab   :  { %v1473_v47 = vadd.f32 %v1472_v36, %v1454_v51  ;;  %v2886_v36 = vor.u32 %v3153_v4, %v2883_v14  ;;  %v3152_v51 = vld [vmem:[%s4712_s6 + $0xe4] sm:$0xf0]  ;;  %1815 = vmatpush.bf16.msra.mxu1 %v2882_v12  ;;  %v2810_v33 = vor.u32 %v3136_v17, %v2809_v16  ;;  %v2769_v4 = vld [vmem:[%s4712_s6 + $0x10] sm:$0xf]  ;;  %v3126_v14 = vld [vmem:[%s4712_s6 + $0x14] sm:$0xf0] }
 0x1ac   :  { %v1436_v6 = vpop.f32.mrf.mxu1  ;;  %v2874_v52 = vor.u32 %v3152_v51, %v2873_v19  ;;  %v2833_v16 = vld [vmem:[%s4712_s6 + $0x90] sm:$0xf]  ;;  %v3142_v17 = vld [vmem:[%s4712_s6 + $0x94] sm:$0xf0]  ;;  %v3125_v19 = vld [vmem:[%s4712_s6 + $0x14] sm:$0xf]  ;;  %v2770_v20 = vor.u32 %v3126_v14, %v2769_v4 }
 0x1ad   :  { %v1482_v26 = vpack.c.bf16 %v1473_v47, %v1435_v27  ;;  %v1437_v43 = vadd.f32 %v1436_v6, %v1418_v59  ;;  %v3151_v47 = vld [vmem:[%s4712_s6 + $0xe4] sm:$0xf]  ;;  %v2801_v6 = vld [vmem:[%s4712_s6 + $0x50] sm:$0xf]  ;;  %v3134_v59 = vld [vmem:[%s4712_s6 + $0x54] sm:$0xf0]  ;;  %1803 = vmatpush.bf16.msrb.mxu0 %v2810_v33  ;;  %v2834_v57 = vor.u32 %v3142_v17, %v2833_v16 }
 0x1ae   :  { %v3150_v27 = vld [vmem:[%s4712_s6 + $0xd4] sm:$0xf0]  ;;  %v2802_v50 = vor.u32 %v3134_v59, %v2801_v6  ;;  %v2771_v51 = vld [vmem:[%s4712_s6 + $0x18] sm:$0xf0]  ;;  %v3141_v33 = vld [vmem:[%s4712_s6 + $0x94] sm:$0xf] }
 0x1af   :  { %v1561_v24 = vunpack.c.l.b16 %v1482_v26  ;;  %v1562_v34 = vunpack.c.h.b16 %v1482_v26  ;;  %v2867_v26 = vld [vmem:[%s4712_s6 + $0xd8] sm:$0xf0]  ;;  %1816 = vmatpush.bf16.msra.mxu1 %v2874_v52  ;;  %v3161_v17 = vld [vmem:[%s4714_s10 + $0x30] sm:$0xff] }
 0x1b0   :  { %v2870_v31 = vor.u32 %v3149_v25, %v2867_v26  ;;  %v2835_v52 = vld [vmem:[%s4712_s6 + $0x98] sm:$0xf0] }
 0x1b1   :  { %1804 = vmatpush.bf16.msrb.mxu0 %v2802_v50  ;;  %v3123_v50 = vld [vmem:[%s4712_s6 + $0x4] sm:$0xf] }
 0x1b2   :  { %v1474_v54 = vpop.f32.mrf.mxu3 }
 0x1b3   :  { %v1475_v28 = vadd.f32 %v1474_v54, %v1456_v21  ;;  %v2878_v21 = vor.u32 %v3151_v47, %v2875_v62  ;;  %v2803_v54 = vld [vmem:[%s4712_s6 + $0x58] sm:$0xf0]  ;;  %v2774_v47 = vor.u32 %v3125_v19, %v2771_v51  ;;  %v3169_v19 = vld [vmem:[%s4714_s10 + $0x70] sm:$0xff]  ;;  %v3160_v51 = vld [vmem:[%s4714_s10 + $0x28] sm:$0xff] }
 0x1b5   :  { %v1484_v29 = vpack.c.bf16 %v1475_v28, %v1437_v43  ;;  %v2866_v43 = vor.u32 %v3150_v27, %v2865_v22  ;;  %v2806_v28 = vor.u32 %v3133_v23, %v2803_v54  ;;  %1805 = vmatpush.bf16.msrb.mxu0 %v2794_v11  ;;  %v3124_v22 = vld [vmem:[%s4712_s6 + $0x4] sm:$0xf0]  ;;  %v2763_v54 = vld [vmem:[%s4712_s6 + $0x8] sm:$0xf0] }
 0x1b6   :  { %v3140_v23 = vld [vmem:[%s4712_s6 + $0x84] sm:$0xf0]  ;;  %v2766_v26 = vor.u32 %v3123_v50, %v2763_v54 }
 0x1b7   :  { %v1563_v38 = vunpack.c.l.b16 %v1484_v29  ;;  %v1564_v39 = vunpack.c.h.b16 %v1484_v29  ;;  %v2857_v29 = vld [vmem:[%s4712_s6 + $0xc0] sm:$0xf]  ;;  %1817 = vmatpush.bf16.msra.mxu1 %v2866_v43  ;;  %v3139_v43 = vld [vmem:[%s4712_s6 + $0x84] sm:$0xf] }
 0x1b9   :  { %v1567_v42 = vpack.c.b16 %v1563_v38, %v1561_v24  ;;  %v1568_v53 = vpack.c.b16 %v1564_v39, %v1562_v34  ;;  %v3148_v24 = vld [vmem:[%s4712_s6 + $0xc4] sm:$0xf0]  ;;  %v3131_v34 = vld [vmem:[%s4712_s6 + $0x44] sm:$0xf]  ;;  %v2795_v38 = vld [vmem:[%s4712_s6 + $0x48] sm:$0xf0] }
 0x1ba   :  { %v3147_v39 = vld [vmem:[%s4712_s6 + $0xc4] sm:$0xf] }
 0x1bb   :  { %1582 = vmatpush.bf16.msra.mxu2 %v1567_v42  ;;  %1595 = vmatpush.bf16.msrb.mxu3 %v1568_v53  ;;  %v2858_v42 = vor.u32 %v3148_v24, %v2857_v29  ;;  %v2798_v53 = vor.u32 %v3131_v34, %v2795_v38 }
 0x1bd   :  { %1818 = vmatpush.bf16.msra.mxu1 %v2858_v42 }
 0x1bf   :  { %1583 = vmatpush.bf16.msra.mxu2 %v1565_v46  ;;  %1596 = vmatpush.bf16.msrb.mxu3 %v1566_v49  ;;  %v2849_v46 = vld [vmem:[%s4712_s6 + $0xb0] sm:$0xf]  ;;  %v2862_v49 = vor.u32 %v3147_v39, %v2859_v40  ;;  %v1636_v39 = vld [vmem:[%s4713_s7] sm:$0x3] }
 0x1c0   :  { %v1638_v40 = vperm.slane %v1636_v39, 0 }
 0x1c3   :  { %1828 = vmatpush.bf16.msrb.mxu2 %v2822_v13  ;;  %1841 = vmatpush.bf16.msra.mxu3 %v2886_v36  ;;  %v2782_v13 = vor.u32 %v3127_v9, %v2779_v10  ;;  %v2846_v36 = vor.u32 %v3143_v44, %v2843_v61 }
 0x1c7   :  { %1829 = vmatpush.bf16.msrb.mxu2 %v2814_v56  ;;  %1842 = vmatpush.bf16.msra.mxu3 %v2878_v21  ;;  %v2838_v56 = vor.u32 %v3141_v33, %v2835_v52  ;;  %v2761_v21 = vld [vmem:[%s4712_s6] sm:$0xf]  ;;  %v3168_v33 = vld [vmem:[%s4714_s10 + $0x68] sm:$0xff] }
 0x1c8   :  { %v2762_v27 = vor.u32 %v3124_v22, %v2761_v21  ;;  %v3159_v52 = vld [vmem:[%s4714_s10 + $0x20] sm:$0xff] }
 0x1c9   :  { %v3155_v21 = vld [vmem:[%s4714_s10] sm:$0xff] }
 0x1ca   :  { %v3163_v22 = vld [vmem:[%s4714_s10 + $0x40] sm:$0xff] }
 0x1cb   :  { %1830 = vmatpush.bf16.msrb.mxu2 %v2806_v28  ;;  %1843 = vmatpush.bf16.msra.mxu3 %v2870_v31  ;;  %v2827_v28 = vld [vmem:[%s4712_s6 + $0x88] sm:$0xf0] }
 0x1cc   :  { %v2830_v3 = vor.u32 %v3139_v43, %v2827_v28  ;;  %v1888_v43 = vld [vmem:[%s4716_s8] sm:$0x3] }
 0x1cf   :  { %1831 = vmatpush.bf16.msrb.mxu2 %v2798_v53  ;;  %1844 = vmatpush.bf16.msra.mxu3 %v2862_v49 }
 0x227   :  { %v1536_v35 = vpop.f32.mrf.mxu1 }
 0x22d   :  { %v1523_v58 = vpop.f32.mrf.mxu2 }
 0x22e   :  { %v1524_v60 = vadd.f32 %v1523_v58, %v1486_v55  ;;  %v3129_v55 = vld [vmem:[%s4712_s6 + $0x34] sm:$0xf]  ;;  %v2787_v58 = vld [vmem:[%s4712_s6 + $0x38] sm:$0xf0] }
 0x22f   :  { %v1538_v63 = vpop.f32.mrf.mxu1 }
 0x230   :  { %v1537_v48 = vadd.f32 %v1536_v35, %v1524_v60  ;;  %v3146_v35 = vld [vmem:[%s4712_s6 + $0xb4] sm:$0xf0]  ;;  %v3145_v60 = vld [vmem:[%s4712_s6 + $0xb4] sm:$0xf]  ;;  %v2851_v63 = vld [vmem:[%s4712_s6 + $0xb8] sm:$0xf0] }
 0x232   :  { %v1541_v0 = vsel %vm1540_vm0, %v1537_v48, -inf }
 0x233   :  { %1542 = vmax.xlane.f32.xlu0 %v1541_v0  ;;  %v2850_v0 = vor.u32 %v3146_v35, %v2849_v46 }
 0x235   :  { %v1525_v1 = vpop.f32.mrf.mxu2  ;;  %1819 = vmatpush.bf16.msra.mxu1 %v2850_v0 }
 0x236   :  { %v2790_v1 = vor.u32 %v3129_v55, %v2787_v58 }
 0x238   :  { %1832 = vmatpush.bf16.msrb.mxu2 %v2790_v1 }
 0x23c   :  { %1833 = vmatpush.bf16.msrb.mxu2 %v2782_v13 }
 0x240   :  { %1834 = vmatpush.bf16.msrb.mxu2 %v2774_v47  ;;  %v3166_v47 = vld [vmem:[%s4714_s10 + $0x58] sm:$0xff] }
 0x244   :  { %1835 = vmatpush.bf16.msrb.mxu2 %v2766_v26 }
 0x2a6   :  { %v1543_v5 = vpop.xlane.xlu0 %1542 }
 0x2a7   :  { %v1544_v7 = vsub.f32 %v1537_v48, %v1543_v5  ;;  %v2786_v48 = vor.u32 %v3130_v41, %v2785_v37  ;;  %v2777_v5 = vld [vmem:[%s4712_s6 + $0x20] sm:$0xf]  ;;  %v1639_v37 = vperm.slane %v1636_v39, 1 }
 0x2a9   :  { %v1545_v18 = vmul.f32 1.442695, %v1544_v7  ;;  %v3128_v7 = vld [vmem:[%s4712_s6 + $0x24] sm:$0xf0]  ;;  %1806 = vmatpush.bf16.msrb.mxu0 %v2786_v48 }
 0x2aa   :  { %v2778_v2 = vor.u32 %v3128_v7, %v2777_v5  ;;  %v3181_v7 = vmov 256.0  }
 0x2ab   :  { %3173 = vpow2.f32 %v1545_v18  ;;  %v2841_v18 = vld [vmem:[%s4712_s6 + $0xa0] sm:$0xf] }
 0x2ac   :  { %v2842_v12 = vor.u32 %v3144_v8, %v2841_v18  ;;  %v3162_v18 = vld [vmem:[%s4714_s10 + $0x38] sm:$0xff] }
 0x2ad   :  { %1807 = vmatpush.bf16.msrb.mxu0 %v2778_v2 }
 0x2ae   :  { %1820 = vmatpush.bf16.msra.mxu1 %v2842_v12 }
 0x2b1   :  { %v4443_v30 = vpop.eup %3173  ;;  %1808 = vmatpush.bf16.msrb.mxu0 %v2770_v20  ;;  %v3167_v20 = vld [vmem:[%s4714_s10 + $0x60] sm:$0xff] }
 0x2b2   :  { %v1547_v45 = vsel %vm1540_vm0, %v4443_v30, 0.0  ;;  %1821 = vmatpush.bf16.msra.mxu1 %v2834_v57  ;;  %v3158_v57 = vld [vmem:[%s4714_s10 + $0x18] sm:$0xff] }
 0x2b3   :  { %1548 = vadd.xlane.f32.xlu0 %v1547_v45  ;;  %v2854_v45 = vor.u32 %v3145_v60, %v2851_v63 }
 0x2b5   :  { %1845 = vmatpush.bf16.msra.mxu3 %v2854_v45  ;;  %1809 = vmatpush.bf16.msrb.mxu0 %v2762_v27  ;;  %v3170_v45 = vld [vmem:[%s4714_s10 + $0x78] sm:$0xff] }
 0x2b9   :  { %1846 = vmatpush.bf16.msra.mxu3 %v2846_v36  ;;  %2038 = vmatpush.bf16.msra.mxu0 %v3162_v18 }
 0x2bd   :  { %1847 = vmatpush.bf16.msra.mxu3 %v2838_v56  ;;  %2039 = vmatpush.bf16.msra.mxu0 %v3161_v17  ;;  %v3157_v56 = vld [vmem:[%s4714_s10 + $0x10] sm:$0xff] }
 0x2c1   :  { %1848 = vmatpush.bf16.msra.mxu3 %v2830_v3  ;;  %2040 = vmatpush.bf16.msra.mxu0 %v3160_v51 }
 0x2c5   :  { %2041 = vmatpush.bf16.msra.mxu0 %v3159_v52 }
 0x2c9   :  { %2042 = vmatpush.bf16.msra.mxu0 %v3158_v57 }
 0x2cd   :  { %2043 = vmatpush.bf16.msra.mxu0 %v3157_v56 }
 0x326   :  { %v1549_v15 = vpop.xlane.xlu0 %1548 }
 0x327   :  { %3175 = vrcp.f32 %v1549_v15 }
 0x328   :  { %3177 = vrcp.f32 %v3181_v7 }
 0x32d   :  { %v3176_v62 = vpop.eup %3175 }
 0x32e   :  { %v1551_v6 = vmul.f32 %v3176_v62, %v4443_v30  ;;  %v2825_v30 = vld [vmem:[%s4712_s6 + $0x80] sm:$0xf]  ;;  %v3178_v8 = vpop.eup %3177  ;;  %v3165_v62 = vld [vmem:[%s4714_s10 + $0x50] sm:$0xff] }
 0x32f   :  { %v2826_v25 = vor.u32 %v3140_v23, %v2825_v30  ;;  %v1860_v9 = vmul.f32 256.0, %v3178_v8  ;;  %vm1864_vm1 = vweird.f32 %v3178_v8 }
 0x330   :  { %v1552_v59 = vpack.c.bf16 %v1551_v6, %v1551_v6  ;;  %v3156_v6 = vld [vmem:[%s4714_s10 + $0x8] sm:$0xff] }
 0x331   :  { %1822 = vmatpush.bf16.msra.mxu1 %v2826_v25  ;;  %v1861_v10 = vsub.f32 1.0, %v1860_v9  ;;  %2044 = vmatpush.bf16.msra.mxu0 %v3156_v6 }
 0x332   :  { %2757 = vmatmul.msk.bf16.vlgmr.msra.gmra.mxu2 %vm1540_vm0, %v1552_v59  ;;  %2758 = vmatmul.msk.bf16.vlgmr.msrb.gmra.mxu3 %vm1540_vm0, %v1552_v59  ;;  %v3164_v59 = vld [vmem:[%s4714_s10 + $0x48] sm:$0xff] }
 0x333   :  { %v1862_v44 = vmul.f32 %v3178_v8, %v1861_v10 }
 0x335   :  { %2051 = vmatpush.bf16.msrb.mxu1 %v3170_v45  ;;  %v1863_v61 = vadd.f32 %v3178_v8, %v1862_v44  ;;  %2045 = vmatpush.bf16.msra.mxu0 %v3155_v21 }
 0x337   :  { %v1865_v2 = vsel %vm1864_vm1, %v3178_v8, %v1863_v61 }
 0x339   :  { %2052 = vmatpush.bf16.msrb.mxu1 %v3169_v19 }
 0x33d   :  { %2053 = vmatpush.bf16.msrb.mxu1 %v3168_v33 }
 0x341   :  { %2054 = vmatpush.bf16.msrb.mxu1 %v3167_v20 }
 0x345   :  { %2055 = vmatpush.bf16.msrb.mxu1 %v3166_v47 }
 0x349   :  { %2056 = vmatpush.bf16.msrb.mxu1 %v3165_v62 }
 0x34d   :  { %2057 = vmatpush.bf16.msrb.mxu1 %v3164_v59 }
 0x351   :  { %2058 = vmatpush.bf16.msrb.mxu1 %v3163_v22 }
 0x3b5   :  { %v1585_v32 = vpop.f32.mrf.mxu2  ;;  %v1598_v29 = vpop.f32.mrf.mxu3 }
 0x3b6   :  { %v1602_v31 = vpack.c.bf16 %v1585_v32, %v1585_v32  ;;  %v1603_v24 = vpack.c.bf16 %v1598_v29, %v1598_v29  ;;  %v1896_v32 = vld [vmem:[%s4717_s9] sm:$0x3]  ;;  %v1891_v29 = vperm.slane %v1888_v43, 1 }
 0x3b7   :  { %v1898_v39 = vperm.slane %v1896_v32, 0 }
 0x3b8   :  { %1810 = vmatmul.bf16.vlgmr.msrb.gmra.mxu0 %v1602_v31  ;;  %1823 = vmatmul.bf16.vlgmr.msra.gmra.mxu1 %v1603_v24 }
 0x3b9   :  { %1836 = vmatmul.bf16.vlgmr.msrb.gmra.mxu2 %v1602_v31  ;;  %1849 = vmatmul.bf16.vlgmr.msra.gmra.mxu3 %v1603_v24  ;;  %v1890_v31 = vperm.slane %v1888_v43, 0 }
 0x3bd   :  { %v1587_v34 = vpop.f32.mrf.mxu2  ;;  %v1600_v38 = vpop.f32.mrf.mxu3 }
 0x435   :  { %v1811_v11 = vpop.f32.mrf.mxu0  ;;  %v1824_v42 = vpop.f32.mrf.mxu1 }
 0x436   :  { %v1812_v53 = vadd.f32 %v1811_v11, %v1638_v40  ;;  %v1899_v40 = vperm.slane %v1896_v32, 1 }
 0x438   :  { %v1825_v49 = vadd.f32 %v1824_v42, %v1812_v53 }
 0x43a   :  { %v1854_v63 = vmax.f32 %v1825_v49, 0.0  ;;  %v3172_v49 = vld [vmem:[%s4715_s11] ss:$0 sm:$0xff] }
 0x43c   :  { %v1837_v41 = vpop.f32.mrf.mxu2  ;;  %v1850_v46 = vpop.f32.mrf.mxu3 }
 0x43d   :  { %v1838_v35 = vadd.f32 %v1837_v41, %v1639_v37  ;;  %v1813_v55 = vpop.f32.mrf.mxu0  ;;  %v1826_v58 = vpop.f32.mrf.mxu1 }
 0x43f   :  { %v1851_v60 = vadd.f32 %v1850_v46, %v1838_v35 }
 0x441   :  { %v1855_v48 = vmax.f32 %v1851_v60, 0.0 }
 0x443   :  { %v1856_v0 = vadd.f32 %v1855_v48, %v1854_v63 }
 0x444   :  { %v1839_v1 = vpop.f32.mrf.mxu2  ;;  %v1852_v5 = vpop.f32.mrf.mxu3 }
 0x445   :  { %1857 = vadd.xlane.f32.xlu1 %v1856_v0 }
 0x4b8   :  { %v1858_v15 = vpop.xlane.xlu1 %1857 }
 0x4b9   :  { %v1866_v12 = vmul.f32 %v1865_v2, %v1858_v15 }
 0x4bb   :  { %v1867_v13 = vsub.f32 %v1854_v63, %v1866_v12  ;;  %v1868_v4 = vsub.f32 %v1855_v48, %v1866_v12 }
 0x4bd   :  { %v1869_v14 = vmul.f32 %v1867_v13, %v1867_v13  ;;  %v1870_v16 = vmul.f32 %v1868_v4, %v1868_v4 }
 0x4bf   :  { %v1871_v36 = vadd.f32 %v1870_v16, %v1869_v14 }
 0x4c1   :  { %1872 = vadd.xlane.f32.xlu1 %v1871_v36 }
 0x534   :  { %v1873_v30 = vpop.xlane.xlu1 %1872 }
 0x535   :  { %v1874_v27 = vmul.f32 %v1873_v30, %v1865_v2 }
 0x537   :  { %v1875_v23 = vadd.f32 1e-05, %v1874_v27 }
 0x539   :  { %3179 = vrsqrt.f32 %v1875_v23  ;;  %vm1882_vm3 = vweird.f32 %v1875_v23 }
 0x53f   :  { %v3180_v50 = vpop.eup %3179 }
 0x540   :  { %v1877_v54 = vmul.f32 %v3180_v50, %v1875_v23  ;;  %vm1883_vm2 = vweird.f32 %v3180_v50 }
 0x541   :  { %vm1884_vm4 = vmor %vm1882_vm3, %vm1883_vm2 }
 0x542   :  { %v1878_v25 = vmul.f32 %v3180_v50, %v1877_v54 }
 0x544   :  { %v1879_v26 = vmul.f32 0.5, %v1878_v25 }
 0x546   :  { %v1880_v28 = vsub.f32 1.5, %v1879_v26 }
 0x548   :  { %v1881_v3 = vmul.f32 %v3180_v50, %v1880_v28 }
 0x54a   :  { %v1885_v24 = vsel %vm1884_vm4, %v3180_v50, %v1881_v3 }
 0x54b   :  { %v1886_v34 = vmul.f32 %v1885_v24, %v1867_v13  ;;  %v1887_v38 = vmul.f32 %v1885_v24, %v1868_v4 }
 0x54d   :  { %v1895_v11 = vmul.f32 %v1891_v29, %v1887_v38  ;;  %v1894_v42 = vmul.f32 %v1890_v31, %v1886_v34 }
 0x54f   :  { %v1902_v53 = vadd.f32 %v1898_v39, %v1894_v42  ;;  %v1903_v37 = vadd.f32 %v1899_v40, %v1895_v11 }
 0x551   :  { %v1904_v41 = vpack.c.bf16 %v1902_v53, %v1902_v53  ;;  %v1905_v46 = vpack.c.bf16 %v1903_v37, %v1903_v37 }
 0x553   :  { %2046 = vmatmul.bf16.vlgmr.msra.gmra.mxu0 %v1904_v41  ;;  %2059 = vmatmul.bf16.vlgmr.msrb.gmra.mxu1 %v1905_v46 }
 0x5d0   :  { %v2047_v35 = vpop.f32.mrf.mxu0  ;;  %v2060_v55 = vpop.f32.mrf.mxu1 }
 0x5d1   :  { %v2048_v58 = vadd.f32 %v3172_v49, %v2047_v35 }
 0x5d3   :  { %v2061_v60 = vadd.f32 %v2060_v55, %v2048_v58 }
 0x5d5   :  { %2064 = vst [vmem:[%s4718_s13] sm:$0xff] %v2061_v60 }
 0x5d8   :  { %v2049_v63 = vpop.f32.mrf.mxu0  ;;  %v2062_v48 = vpop.f32.mrf.mxu1 }

</bundles_post_ra>
